<compile_context>
chip_gen: v5e
topology: v5e:2x2
jax: 0.10.0
libtpu: 0.0.40
codegen_flags: <defaults>
</compile_context>

<pallas_src>
import jax
import jax.numpy as jnp
from jax import lax
from jax.experimental import pallas as pl
from jax.experimental.pallas import tpu as pltpu


def _round_up(n, m):
    return ((n + m - 1) // m) * m


def dqn_lstm_kernel(x_ref, wih_t_ref, whh_t_ref, h0_ref, c0_ref,
                    wlin_t_ref, blin_ref, out_ref, gx_ref):
    """Whole-sequence LSTM + final linear head, entirely in VMEM.

    x_ref     : (T*Bp, Dp)    time-major, batch-padded input; column D_in is a
                              constant 1.0 so the LSTM bias rides in wih_t.
    wih_t_ref : (Dp, 4*Hp)    input->gates weight (transposed, gate-padded,
                              gate order i,f,o,g; row D_in holds b_ih+b_hh).
    whh_t_ref : (Hp, 4*Hp)    hidden->gates weight (transposed, gate-padded).
    h0_ref    : (Bp, Hp)      initial hidden state (zero-padded).
    c0_ref    : (Bp, Hp)      initial cell state (zero-padded).
    wlin_t_ref: (Hp, OUTp)    linear head weight (transposed, padded).
    blin_ref  : (Bp, OUTp)    linear head bias pre-broadcast to a full tile.
    out_ref   : (Bp, OUTp)
    gx_ref    : (T*Bp, 4*Hp)  VMEM scratch: precomputed input-gate projections.
    """
    TB = x_ref.shape[0]
    Bp, Hp = h0_ref.shape
    T = TB // Bp

    # --- Preamble: hoisted input projection, one matmul for the whole
    #     sequence; bias folded in exactly via the augmented ones column. ---
    gx_ref[...] = jnp.dot(x_ref[...], wih_t_ref[...],
                          preferred_element_type=jnp.float32)

    def step(t, carry):
        h, c = carry
        base = pl.multiple_of(t * Bp, Bp)                # sublane-aligned start
        # whh_t_ref indexed inside the step: no 256 KiB value kept live across
        # the 8x-unrolled body (avoids the vreg-pressure cliff / spills).
        gates = (gx_ref[pl.ds(base, Bp), :]
                 + jnp.dot(h, whh_t_ref[...],
                           preferred_element_type=jnp.float32))
        # Gate layout is (i, f, o, g), each a lane-aligned 128-wide block:
        # one sigmoid over 3*Hp lanes, one tanh over Hp lanes.
        sig = jax.nn.sigmoid(gates[:, : 3 * Hp])
        g_g = jnp.tanh(gates[:, 3 * Hp:])
        i_g = sig[:, 0 * Hp:1 * Hp]
        f_g = sig[:, 1 * Hp:2 * Hp]
        o_g = sig[:, 2 * Hp:3 * Hp]
        c_new = f_g * c + i_g * g_g
        h_new = o_g * jnp.tanh(c_new)
        return h_new, c_new

    # T is static and small -> fully unroll so adjacent timesteps interleave.
    h_final, _ = lax.fori_loop(0, T, step, (h0_ref[...], c0_ref[...]),
                               unroll=True)

    # Lane-dense (Bp, OUTp) store; bias is a full tile -> plain aligned add.
    out_ref[...] = (
        jnp.dot(h_final, wlin_t_ref[...], preferred_element_type=jnp.float32)
        + blin_ref[...]
    )


def _dqn_forward_impl(x, hidden, params):
    """JAX wrapper matching DQN.forward(x, hidden)."""
    h0, c0 = hidden                      # each (1, B, H)  (PyTorch (num_layers, B, H))
    w_ih = params["w_ih"]                # (4H, D_in)   PyTorch weight_ih_l0
    w_hh = params["w_hh"]                # (4H, H)      PyTorch weight_hh_l0
    b_ih = params["b_ih"]                # (4H,)
    b_hh = params["b_hh"]                # (4H,)
    w_lin = params["w_lin"]              # (out_dim, H) PyTorch linear.weight
    b_lin = params["b_lin"]              # (out_dim,)

    B, T, D_in = x.shape
    H = w_hh.shape[1]
    OUT = w_lin.shape[0]

    LANE, SUB = 128, 8
    Bp = _round_up(B, SUB)               # sublane-dense batch
    Hp = _round_up(H, LANE)              # lane-aligned per-gate width
    Dp = _round_up(D_in + 1, SUB)        # +1: room for the constant ones column
    OUTp = _round_up(OUT, LANE)          # lane-dense output store

    f32 = jnp.float32
    GATE_PERM = jnp.array([0, 1, 3, 2])  # PyTorch (i,f,g,o) -> kernel (i,f,o,g)

    # x: single write into a pre-padded time-major buffer; column D_in = 1.0
    # carries the LSTM bias through the input projection.
    x_pad = (
        jnp.zeros((T, Bp, Dp), f32)
        .at[:, :B, :D_in].set(jnp.transpose(x.astype(f32), (1, 0, 2)))
        .at[:, :B, D_in].set(1.0)
    )
    x_flat = x_pad.reshape(T * Bp, Dp)

    # Gate-reordered, gate-padded weights. Padded rows/cols/biases are zero,
    # so padded h/c lanes stay exactly zero inside the kernel.
    wih_r = w_ih.astype(f32).reshape(4, H, D_in)[GATE_PERM]          # (4,H,Din)
    wih_r = jnp.pad(wih_r, ((0, 0), (0, Hp - H), (0, 0)))            # (4,Hp,Din)
    wih_core = jnp.transpose(wih_r, (2, 0, 1)).reshape(D_in, 4 * Hp)
    bias = (b_ih + b_hh).astype(f32).reshape(4, H)[GATE_PERM]        # (4,H)
    bias = jnp.pad(bias, ((0, 0), (0, Hp - H))).reshape(4 * Hp)
    wih_t = (jnp.zeros((Dp, 4 * Hp), f32)
             .at[:D_in].set(wih_core)
             .at[D_in].set(bias))                                    # (Dp,4Hp)

    whh_r = w_hh.astype(f32).reshape(4, H, H)[GATE_PERM]             # (4,H,H)
    whh_r = jnp.pad(whh_r, ((0, 0), (0, Hp - H), (0, Hp - H)))       # (4,Hp,Hp)
    whh_t = jnp.transpose(whh_r, (2, 0, 1)).reshape(Hp, 4 * Hp)      # (Hp,4Hp)

    wlin_t = jnp.pad(jnp.transpose(w_lin.astype(f32)),
                     ((0, Hp - H), (0, OUTp - OUT)))                 # (Hp,OUTp)
    blin = jnp.zeros((Bp, OUTp), f32).at[:, :OUT].set(b_lin.astype(f32))

    h0_p = jnp.zeros((Bp, Hp), f32).at[:B, :H].set(h0[0].astype(f32))
    c0_p = jnp.zeros((Bp, Hp), f32).at[:B, :H].set(c0[0].astype(f32))

    vmem = pl.BlockSpec(memory_space=pltpu.MemorySpace.VMEM)  # full array in VMEM

    out_p = pl.pallas_call(
        dqn_lstm_kernel,
        out_shape=jax.ShapeDtypeStruct((Bp, OUTp), f32),
        in_specs=[vmem] * 7,
        out_specs=vmem,
        scratch_shapes=[pltpu.VMEM((T * Bp, 4 * Hp), f32)],
        compiler_params=pltpu.CompilerParams(
            # Explicit limit: v5e's scoped default is only 16 MiB; buffers here
            # total < 1 MiB so 32 MiB is safe headroom on every generation.
            vmem_limit_bytes=32 * 1024 * 1024,
        ),
    )(x_flat, wih_t, whh_t, h0_p, c0_p, wlin_t, blin)

    return out_p[:B, :OUT]


# One jit over prep + pallas_call + slice: the tiny wrapper ops fuse instead of
# each paying a separate launch/HBM round trip.
dqn_forward = jax.jit(_dqn_forward_impl)


def _reference_forward(x, hidden, params):
    """Pure-JAX reference (mirrors torch.nn.LSTM, batch_first=True)."""
    h = hidden[0][0]
    c = hidden[1][0]
    H = params["w_hh"].shape[1]
    w_ih_t = params["w_ih"].T
    w_hh_t = params["w_hh"].T
    b = params["b_ih"] + params["b_hh"]
    for t in range(x.shape[1]):
        gates = x[:, t, :] @ w_ih_t + h @ w_hh_t + b
        i = jax.nn.sigmoid(gates[:, 0:H])
        f = jax.nn.sigmoid(gates[:, H:2 * H])
        g = jnp.tanh(gates[:, 2 * H:3 * H])
        o = jax.nn.sigmoid(gates[:, 3 * H:4 * H])
        c = f * c + i * g
        h = o * jnp.tanh(c)
    return h @ params["w_lin"].T + params["b_lin"]


if __name__ == "__main__":
    # Small shapes consistent with the module: input_dim=1, hidden_dim=5, output_dim=1.
    B, T, D_in, H, OUT = 2, 8, 1, 5, 1

    key = jax.random.PRNGKey(0)
    k = 1.0 / jnp.sqrt(H)
    keys = jax.random.split(key, 8)
    params = {
        "w_ih": jax.random.uniform(keys[0], (4 * H, D_in), jnp.float32, -k, k),
        "w_hh": jax.random.uniform(keys[1], (4 * H, H), jnp.float32, -k, k),
        "b_ih": jax.random.uniform(keys[2], (4 * H,), jnp.float32, -k, k),
        "b_hh": jax.random.uniform(keys[3], (4 * H,), jnp.float32, -k, k),
        "w_lin": jax.random.uniform(keys[4], (OUT, H), jnp.float32, -k, k),
        "b_lin": jax.random.uniform(keys[5], (OUT,), jnp.float32, -k, k),
    }

    x = jax.random.normal(keys[6], (B, T, D_in), jnp.float32)
    # DQN.init_hidden(batch_size): zeros of shape (1, B, H) for both h0 and c0.
    hidden = (jnp.zeros((1, B, H), jnp.float32), jnp.zeros((1, B, H), jnp.float32))

    out = dqn_forward(x, hidden, params)
    out = jax.block_until_ready(out)

    ref = _reference_forward(x, hidden, params)
    assert out.shape == (B, OUT)
    assert jnp.max(jnp.abs(out - ref)) < 1e-4

    print("KERNEL_OK")
</pallas_src>

<mosaic_0001>
module attributes {stable_mosaic.version = 11 : i64} {
  func.func @dqn_lstm_kernel(%arg0: memref<64x8xf32, #tpu.memory_space<vmem>>, %arg1: memref<8x512xf32, #tpu.memory_space<vmem>>, %arg2: memref<128x512xf32, #tpu.memory_space<vmem>>, %arg3: memref<8x128xf32, #tpu.memory_space<vmem>>, %arg4: memref<8x128xf32, #tpu.memory_space<vmem>>, %arg5: memref<128x128xf32, #tpu.memory_space<vmem>>, %arg6: memref<8x128xf32, #tpu.memory_space<vmem>>, %arg7: memref<8x128xf32, #tpu.memory_space<vmem>>, %arg8: memref<64x512xf32, #tpu.memory_space<vmem>>) attributes {dimension_semantics = [], scalar_prefetch = 0 : i64, scratch_operands = 1 : i64, tpu.core_type = #tpu.core_type<tc>} {
    %c0 = arith.constant 0 : index
    %c0_0 = arith.constant 0 : index
    %0 = vector.load %arg0[%c0, %c0_0] : memref<64x8xf32, #tpu.memory_space<vmem>>, vector<64x8xf32>
    %c0_1 = arith.constant 0 : index
    %c0_2 = arith.constant 0 : index
    %1 = vector.load %arg1[%c0_1, %c0_2] : memref<8x512xf32, #tpu.memory_space<vmem>>, vector<8x512xf32>
    %cst = arith.constant dense<0.000000e+00> : vector<64x512xf32>
    %2 = tpu.matmul %0, %1, %cst {dimension_numbers = #tpu.dot_dimension_numbers<[1], [0], [0], [1], [0, 0, 1, 1], [], []>} : vector<64x8xf32>, vector<8x512xf32>, vector<64x512xf32> -> vector<64x512xf32>
    %c0_3 = arith.constant 0 : index
    %c0_4 = arith.constant 0 : index
    %3 = vector.load %arg8[%c0_3, %c0_4] : memref<64x512xf32, #tpu.memory_space<vmem>>, vector<64x512xf32>
    tpu.vector_store %arg8[%c0_3, %c0_4], %2 {strides = array<i32>} : memref<64x512xf32, #tpu.memory_space<vmem>>, vector<64x512xf32>,
    %c0_5 = arith.constant 0 : index
    %c0_6 = arith.constant 0 : index
    %4 = vector.load %arg3[%c0_5, %c0_6] : memref<8x128xf32, #tpu.memory_space<vmem>>, vector<8x128xf32>
    %c0_7 = arith.constant 0 : index
    %c0_8 = arith.constant 0 : index
    %5 = vector.load %arg4[%c0_7, %c0_8] : memref<8x128xf32, #tpu.memory_space<vmem>>, vector<8x128xf32>
    %c0_i32 = arith.constant 0 : i32
    %c8_i32 = arith.constant 8 : i32
    %6 = arith.muli %c0_i32, %c8_i32 : i32
    %7 = tpu.assume_multiple %6, 8 : i32
    %8 = arith.index_cast %7 : i32 to index
    %c0_9 = arith.constant 0 : index
    %9 = vector.load %arg8[%8, %c0_9] : memref<64x512xf32, #tpu.memory_space<vmem>>, vector<8x512xf32>
    %c0_10 = arith.constant 0 : index
    %c0_11 = arith.constant 0 : index
    %10 = vector.load %arg2[%c0_10, %c0_11] : memref<128x512xf32, #tpu.memory_space<vmem>>, vector<128x512xf32>
    %cst_12 = arith.constant dense<0.000000e+00> : vector<8x512xf32>
    %11 = tpu.matmul %4, %10, %cst_12 {dimension_numbers = #tpu.dot_dimension_numbers<[1], [0], [0], [1], [0, 0, 1, 1], [], []>} : vector<8x128xf32>, vector<128x512xf32>, vector<8x512xf32> -> vector<8x512xf32>
    %12 = arith.addf %9, %11 : vector<8x512xf32>
    %13 = vector.extract_strided_slice %12 {offsets = [0, 0], sizes = [8, 384], strides = [1, 1]} : vector<8x512xf32> to vector<8x384xf32>
    %14 = arith.negf %13 : vector<8x384xf32>
    %15 = math.exp %14 : vector<8x384xf32>
    %cst_13 = arith.constant 1.000000e+00 : f32
    %16 = vector.broadcast %cst_13 : f32 to vector<8x384xf32>
    %17 = arith.addf %16, %15 : vector<8x384xf32>
    %18 = arith.divf %16, %17 : vector<8x384xf32>
    %19 = vector.extract_strided_slice %12 {offsets = [0, 384], sizes = [8, 128], strides = [1, 1]} : vector<8x512xf32> to vector<8x128xf32>
    %20 = math.tanh %19 : vector<8x128xf32>
    %21 = vector.extract_strided_slice %18 {offsets = [0, 0], sizes = [8, 128], strides = [1, 1]} : vector<8x384xf32> to vector<8x128xf32>
    %22 = vector.extract_strided_slice %18 {offsets = [0, 128], sizes = [8, 128], strides = [1, 1]} : vector<8x384xf32> to vector<8x128xf32>
    %23 = vector.extract_strided_slice %18 {offsets = [0, 256], sizes = [8, 128], strides = [1, 1]} : vector<8x384xf32> to vector<8x128xf32>
    %24 = arith.mulf %22, %5 : vector<8x128xf32>
    %25 = arith.mulf %21, %20 : vector<8x128xf32>
    %26 = arith.addf %24, %25 : vector<8x128xf32>
    %27 = math.tanh %26 : vector<8x128xf32>
    %28 = arith.mulf %23, %27 : vector<8x128xf32>
    %c1_i32 = arith.constant 1 : i32
    %c8_i32_14 = arith.constant 8 : i32
    %29 = arith.muli %c1_i32, %c8_i32_14 : i32
    %30 = tpu.assume_multiple %29, 8 : i32
    %31 = arith.index_cast %30 : i32 to index
    %c0_15 = arith.constant 0 : index
    %32 = vector.load %arg8[%31, %c0_15] : memref<64x512xf32, #tpu.memory_space<vmem>>, vector<8x512xf32>
    %c0_16 = arith.constant 0 : index
    %c0_17 = arith.constant 0 : index
    %33 = vector.load %arg2[%c0_16, %c0_17] : memref<128x512xf32, #tpu.memory_space<vmem>>, vector<128x512xf32>
    %cst_18 = arith.constant dense<0.000000e+00> : vector<8x512xf32>
    %34 = tpu.matmul %28, %33, %cst_18 {dimension_numbers = #tpu.dot_dimension_numbers<[1], [0], [0], [1], [0, 0, 1, 1], [], []>} : vector<8x128xf32>, vector<128x512xf32>, vector<8x512xf32> -> vector<8x512xf32>
    %35 = arith.addf %32, %34 : vector<8x512xf32>
    %36 = vector.extract_strided_slice %35 {offsets = [0, 0], sizes = [8, 384], strides = [1, 1]} : vector<8x512xf32> to vector<8x384xf32>
    %37 = arith.negf %36 : vector<8x384xf32>
    %38 = math.exp %37 : vector<8x384xf32>
    %cst_19 = arith.constant 1.000000e+00 : f32
    %39 = vector.broadcast %cst_19 : f32 to vector<8x384xf32>
    %40 = arith.addf %39, %38 : vector<8x384xf32>
    %41 = arith.divf %39, %40 : vector<8x384xf32>
    %42 = vector.extract_strided_slice %35 {offsets = [0, 384], sizes = [8, 128], strides = [1, 1]} : vector<8x512xf32> to vector<8x128xf32>
    %43 = math.tanh %42 : vector<8x128xf32>
    %44 = vector.extract_strided_slice %41 {offsets = [0, 0], sizes = [8, 128], strides = [1, 1]} : vector<8x384xf32> to vector<8x128xf32>
    %45 = vector.extract_strided_slice %41 {offsets = [0, 128], sizes = [8, 128], strides = [1, 1]} : vector<8x384xf32> to vector<8x128xf32>
    %46 = vector.extract_strided_slice %41 {offsets = [0, 256], sizes = [8, 128], strides = [1, 1]} : vector<8x384xf32> to vector<8x128xf32>
    %47 = arith.mulf %45, %26 : vector<8x128xf32>
    %48 = arith.mulf %44, %43 : vector<8x128xf32>
    %49 = arith.addf %47, %48 : vector<8x128xf32>
    %50 = math.tanh %49 : vector<8x128xf32>
    %51 = arith.mulf %46, %50 : vector<8x128xf32>
    %c2_i32 = arith.constant 2 : i32
    %c8_i32_20 = arith.constant 8 : i32
    %52 = arith.muli %c2_i32, %c8_i32_20 : i32
    %53 = tpu.assume_multiple %52, 8 : i32
    %54 = arith.index_cast %53 : i32 to index
    %c0_21 = arith.constant 0 : index
    %55 = vector.load %arg8[%54, %c0_21] : memref<64x512xf32, #tpu.memory_space<vmem>>, vector<8x512xf32>
    %c0_22 = arith.constant 0 : index
    %c0_23 = arith.constant 0 : index
    %56 = vector.load %arg2[%c0_22, %c0_23] : memref<128x512xf32, #tpu.memory_space<vmem>>, vector<128x512xf32>
    %cst_24 = arith.constant dense<0.000000e+00> : vector<8x512xf32>
    %57 = tpu.matmul %51, %56, %cst_24 {dimension_numbers = #tpu.dot_dimension_numbers<[1], [0], [0], [1], [0, 0, 1, 1], [], []>} : vector<8x128xf32>, vector<128x512xf32>, vector<8x512xf32> -> vector<8x512xf32>
    %58 = arith.addf %55, %57 : vector<8x512xf32>
    %59 = vector.extract_strided_slice %58 {offsets = [0, 0], sizes = [8, 384], strides = [1, 1]} : vector<8x512xf32> to vector<8x384xf32>
    %60 = arith.negf %59 : vector<8x384xf32>
    %61 = math.exp %60 : vector<8x384xf32>
    %cst_25 = arith.constant 1.000000e+00 : f32
    %62 = vector.broadcast %cst_25 : f32 to vector<8x384xf32>
    %63 = arith.addf %62, %61 : vector<8x384xf32>
    %64 = arith.divf %62, %63 : vector<8x384xf32>
    %65 = vector.extract_strided_slice %58 {offsets = [0, 384], sizes = [8, 128], strides = [1, 1]} : vector<8x512xf32> to vector<8x128xf32>
    %66 = math.tanh %65 : vector<8x128xf32>
    %67 = vector.extract_strided_slice %64 {offsets = [0, 0], sizes = [8, 128], strides = [1, 1]} : vector<8x384xf32> to vector<8x128xf32>
    %68 = vector.extract_strided_slice %64 {offsets = [0, 128], sizes = [8, 128], strides = [1, 1]} : vector<8x384xf32> to vector<8x128xf32>
    %69 = vector.extract_strided_slice %64 {offsets = [0, 256], sizes = [8, 128], strides = [1, 1]} : vector<8x384xf32> to vector<8x128xf32>
    %70 = arith.mulf %68, %49 : vector<8x128xf32>
    %71 = arith.mulf %67, %66 : vector<8x128xf32>
    %72 = arith.addf %70, %71 : vector<8x128xf32>
    %73 = math.tanh %72 : vector<8x128xf32>
    %74 = arith.mulf %69, %73 : vector<8x128xf32>
    %c3_i32 = arith.constant 3 : i32
    %c8_i32_26 = arith.constant 8 : i32
    %75 = arith.muli %c3_i32, %c8_i32_26 : i32
    %76 = tpu.assume_multiple %75, 8 : i32
    %77 = arith.index_cast %76 : i32 to index
    %c0_27 = arith.constant 0 : index
    %78 = vector.load %arg8[%77, %c0_27] : memref<64x512xf32, #tpu.memory_space<vmem>>, vector<8x512xf32>
    %c0_28 = arith.constant 0 : index
    %c0_29 = arith.constant 0 : index
    %79 = vector.load %arg2[%c0_28, %c0_29] : memref<128x512xf32, #tpu.memory_space<vmem>>, vector<128x512xf32>
    %cst_30 = arith.constant dense<0.000000e+00> : vector<8x512xf32>
    %80 = tpu.matmul %74, %79, %cst_30 {dimension_numbers = #tpu.dot_dimension_numbers<[1], [0], [0], [1], [0, 0, 1, 1], [], []>} : vector<8x128xf32>, vector<128x512xf32>, vector<8x512xf32> -> vector<8x512xf32>
    %81 = arith.addf %78, %80 : vector<8x512xf32>
    %82 = vector.extract_strided_slice %81 {offsets = [0, 0], sizes = [8, 384], strides = [1, 1]} : vector<8x512xf32> to vector<8x384xf32>
    %83 = arith.negf %82 : vector<8x384xf32>
    %84 = math.exp %83 : vector<8x384xf32>
    %cst_31 = arith.constant 1.000000e+00 : f32
    %85 = vector.broadcast %cst_31 : f32 to vector<8x384xf32>
    %86 = arith.addf %85, %84 : vector<8x384xf32>
    %87 = arith.divf %85, %86 : vector<8x384xf32>
    %88 = vector.extract_strided_slice %81 {offsets = [0, 384], sizes = [8, 128], strides = [1, 1]} : vector<8x512xf32> to vector<8x128xf32>
    %89 = math.tanh %88 : vector<8x128xf32>
    %90 = vector.extract_strided_slice %87 {offsets = [0, 0], sizes = [8, 128], strides = [1, 1]} : vector<8x384xf32> to vector<8x128xf32>
    %91 = vector.extract_strided_slice %87 {offsets = [0, 128], sizes = [8, 128], strides = [1, 1]} : vector<8x384xf32> to vector<8x128xf32>
    %92 = vector.extract_strided_slice %87 {offsets = [0, 256], sizes = [8, 128], strides = [1, 1]} : vector<8x384xf32> to vector<8x128xf32>
    %93 = arith.mulf %91, %72 : vector<8x128xf32>
    %94 = arith.mulf %90, %89 : vector<8x128xf32>
    %95 = arith.addf %93, %94 : vector<8x128xf32>
    %96 = math.tanh %95 : vector<8x128xf32>
    %97 = arith.mulf %92, %96 : vector<8x128xf32>
    %c4_i32 = arith.constant 4 : i32
    %c8_i32_32 = arith.constant 8 : i32
    %98 = arith.muli %c4_i32, %c8_i32_32 : i32
    %99 = tpu.assume_multiple %98, 8 : i32
    %100 = arith.index_cast %99 : i32 to index
    %c0_33 = arith.constant 0 : index
    %101 = vector.load %arg8[%100, %c0_33] : memref<64x512xf32, #tpu.memory_space<vmem>>, vector<8x512xf32>
    %c0_34 = arith.constant 0 : index
    %c0_35 = arith.constant 0 : index
    %102 = vector.load %arg2[%c0_34, %c0_35] : memref<128x512xf32, #tpu.memory_space<vmem>>, vector<128x512xf32>
    %cst_36 = arith.constant dense<0.000000e+00> : vector<8x512xf32>
    %103 = tpu.matmul %97, %102, %cst_36 {dimension_numbers = #tpu.dot_dimension_numbers<[1], [0], [0], [1], [0, 0, 1, 1], [], []>} : vector<8x128xf32>, vector<128x512xf32>, vector<8x512xf32> -> vector<8x512xf32>
    %104 = arith.addf %101, %103 : vector<8x512xf32>
    %105 = vector.extract_strided_slice %104 {offsets = [0, 0], sizes = [8, 384], strides = [1, 1]} : vector<8x512xf32> to vector<8x384xf32>
    %106 = arith.negf %105 : vector<8x384xf32>
    %107 = math.exp %106 : vector<8x384xf32>
    %cst_37 = arith.constant 1.000000e+00 : f32
    %108 = vector.broadcast %cst_37 : f32 to vector<8x384xf32>
    %109 = arith.addf %108, %107 : vector<8x384xf32>
    %110 = arith.divf %108, %109 : vector<8x384xf32>
    %111 = vector.extract_strided_slice %104 {offsets = [0, 384], sizes = [8, 128], strides = [1, 1]} : vector<8x512xf32> to vector<8x128xf32>
    %112 = math.tanh %111 : vector<8x128xf32>
    %113 = vector.extract_strided_slice %110 {offsets = [0, 0], sizes = [8, 128], strides = [1, 1]} : vector<8x384xf32> to vector<8x128xf32>
    %114 = vector.extract_strided_slice %110 {offsets = [0, 128], sizes = [8, 128], strides = [1, 1]} : vector<8x384xf32> to vector<8x128xf32>
    %115 = vector.extract_strided_slice %110 {offsets = [0, 256], sizes = [8, 128], strides = [1, 1]} : vector<8x384xf32> to vector<8x128xf32>
    %116 = arith.mulf %114, %95 : vector<8x128xf32>
    %117 = arith.mulf %113, %112 : vector<8x128xf32>
    %118 = arith.addf %116, %117 : vector<8x128xf32>
    %119 = math.tanh %118 : vector<8x128xf32>
    %120 = arith.mulf %115, %119 : vector<8x128xf32>
    %c5_i32 = arith.constant 5 : i32
    %c8_i32_38 = arith.constant 8 : i32
    %121 = arith.muli %c5_i32, %c8_i32_38 : i32
    %122 = tpu.assume_multiple %121, 8 : i32
    %123 = arith.index_cast %122 : i32 to index
    %c0_39 = arith.constant 0 : index
    %124 = vector.load %arg8[%123, %c0_39] : memref<64x512xf32, #tpu.memory_space<vmem>>, vector<8x512xf32>
    %c0_40 = arith.constant 0 : index
    %c0_41 = arith.constant 0 : index
    %125 = vector.load %arg2[%c0_40, %c0_41] : memref<128x512xf32, #tpu.memory_space<vmem>>, vector<128x512xf32>
    %cst_42 = arith.constant dense<0.000000e+00> : vector<8x512xf32>
    %126 = tpu.matmul %120, %125, %cst_42 {dimension_numbers = #tpu.dot_dimension_numbers<[1], [0], [0], [1], [0, 0, 1, 1], [], []>} : vector<8x128xf32>, vector<128x512xf32>, vector<8x512xf32> -> vector<8x512xf32>
    %127 = arith.addf %124, %126 : vector<8x512xf32>
    %128 = vector.extract_strided_slice %127 {offsets = [0, 0], sizes = [8, 384], strides = [1, 1]} : vector<8x512xf32> to vector<8x384xf32>
    %129 = arith.negf %128 : vector<8x384xf32>
    %130 = math.exp %129 : vector<8x384xf32>
    %cst_43 = arith.constant 1.000000e+00 : f32
    %131 = vector.broadcast %cst_43 : f32 to vector<8x384xf32>
    %132 = arith.addf %131, %130 : vector<8x384xf32>
    %133 = arith.divf %131, %132 : vector<8x384xf32>
    %134 = vector.extract_strided_slice %127 {offsets = [0, 384], sizes = [8, 128], strides = [1, 1]} : vector<8x512xf32> to vector<8x128xf32>
    %135 = math.tanh %134 : vector<8x128xf32>
    %136 = vector.extract_strided_slice %133 {offsets = [0, 0], sizes = [8, 128], strides = [1, 1]} : vector<8x384xf32> to vector<8x128xf32>
    %137 = vector.extract_strided_slice %133 {offsets = [0, 128], sizes = [8, 128], strides = [1, 1]} : vector<8x384xf32> to vector<8x128xf32>
    %138 = vector.extract_strided_slice %133 {offsets = [0, 256], sizes = [8, 128], strides = [1, 1]} : vector<8x384xf32> to vector<8x128xf32>
    %139 = arith.mulf %137, %118 : vector<8x128xf32>
    %140 = arith.mulf %136, %135 : vector<8x128xf32>
    %141 = arith.addf %139, %140 : vector<8x128xf32>
    %142 = math.tanh %141 : vector<8x128xf32>
    %143 = arith.mulf %138, %142 : vector<8x128xf32>
    %c6_i32 = arith.constant 6 : i32
    %c8_i32_44 = arith.constant 8 : i32
    %144 = arith.muli %c6_i32, %c8_i32_44 : i32
    %145 = tpu.assume_multiple %144, 8 : i32
    %146 = arith.index_cast %145 : i32 to index
    %c0_45 = arith.constant 0 : index
    %147 = vector.load %arg8[%146, %c0_45] : memref<64x512xf32, #tpu.memory_space<vmem>>, vector<8x512xf32>
    %c0_46 = arith.constant 0 : index
    %c0_47 = arith.constant 0 : index
    %148 = vector.load %arg2[%c0_46, %c0_47] : memref<128x512xf32, #tpu.memory_space<vmem>>, vector<128x512xf32>
    %cst_48 = arith.constant dense<0.000000e+00> : vector<8x512xf32>
    %149 = tpu.matmul %143, %148, %cst_48 {dimension_numbers = #tpu.dot_dimension_numbers<[1], [0], [0], [1], [0, 0, 1, 1], [], []>} : vector<8x128xf32>, vector<128x512xf32>, vector<8x512xf32> -> vector<8x512xf32>
    %150 = arith.addf %147, %149 : vector<8x512xf32>
    %151 = vector.extract_strided_slice %150 {offsets = [0, 0], sizes = [8, 384], strides = [1, 1]} : vector<8x512xf32> to vector<8x384xf32>
    %152 = arith.negf %151 : vector<8x384xf32>
    %153 = math.exp %152 : vector<8x384xf32>
    %cst_49 = arith.constant 1.000000e+00 : f32
    %154 = vector.broadcast %cst_49 : f32 to vector<8x384xf32>
    %155 = arith.addf %154, %153 : vector<8x384xf32>
    %156 = arith.divf %154, %155 : vector<8x384xf32>
    %157 = vector.extract_strided_slice %150 {offsets = [0, 384], sizes = [8, 128], strides = [1, 1]} : vector<8x512xf32> to vector<8x128xf32>
    %158 = math.tanh %157 : vector<8x128xf32>
    %159 = vector.extract_strided_slice %156 {offsets = [0, 0], sizes = [8, 128], strides = [1, 1]} : vector<8x384xf32> to vector<8x128xf32>
    %160 = vector.extract_strided_slice %156 {offsets = [0, 128], sizes = [8, 128], strides = [1, 1]} : vector<8x384xf32> to vector<8x128xf32>
    %161 = vector.extract_strided_slice %156 {offsets = [0, 256], sizes = [8, 128], strides = [1, 1]} : vector<8x384xf32> to vector<8x128xf32>
    %162 = arith.mulf %160, %141 : vector<8x128xf32>
    %163 = arith.mulf %159, %158 : vector<8x128xf32>
    %164 = arith.addf %162, %163 : vector<8x128xf32>
    %165 = math.tanh %164 : vector<8x128xf32>
    %166 = arith.mulf %161, %165 : vector<8x128xf32>
    %c7_i32 = arith.constant 7 : i32
    %c8_i32_50 = arith.constant 8 : i32
    %167 = arith.muli %c7_i32, %c8_i32_50 : i32
    %168 = tpu.assume_multiple %167, 8 : i32
    %169 = arith.index_cast %168 : i32 to index
    %c0_51 = arith.constant 0 : index
    %170 = vector.load %arg8[%169, %c0_51] : memref<64x512xf32, #tpu.memory_space<vmem>>, vector<8x512xf32>
    %c0_52 = arith.constant 0 : index
    %c0_53 = arith.constant 0 : index
    %171 = vector.load %arg2[%c0_52, %c0_53] : memref<128x512xf32, #tpu.memory_space<vmem>>, vector<128x512xf32>
    %cst_54 = arith.constant dense<0.000000e+00> : vector<8x512xf32>
    %172 = tpu.matmul %166, %171, %cst_54 {dimension_numbers = #tpu.dot_dimension_numbers<[1], [0], [0], [1], [0, 0, 1, 1], [], []>} : vector<8x128xf32>, vector<128x512xf32>, vector<8x512xf32> -> vector<8x512xf32>
    %173 = arith.addf %170, %172 : vector<8x512xf32>
    %174 = vector.extract_strided_slice %173 {offsets = [0, 0], sizes = [8, 384], strides = [1, 1]} : vector<8x512xf32> to vector<8x384xf32>
    %175 = arith.negf %174 : vector<8x384xf32>
    %176 = math.exp %175 : vector<8x384xf32>
    %cst_55 = arith.constant 1.000000e+00 : f32
    %177 = vector.broadcast %cst_55 : f32 to vector<8x384xf32>
    %178 = arith.addf %177, %176 : vector<8x384xf32>
    %179 = arith.divf %177, %178 : vector<8x384xf32>
    %180 = vector.extract_strided_slice %173 {offsets = [0, 384], sizes = [8, 128], strides = [1, 1]} : vector<8x512xf32> to vector<8x128xf32>
    %181 = math.tanh %180 : vector<8x128xf32>
    %182 = vector.extract_strided_slice %179 {offsets = [0, 0], sizes = [8, 128], strides = [1, 1]} : vector<8x384xf32> to vector<8x128xf32>
    %183 = vector.extract_strided_slice %179 {offsets = [0, 128], sizes = [8, 128], strides = [1, 1]} : vector<8x384xf32> to vector<8x128xf32>
    %184 = vector.extract_strided_slice %179 {offsets = [0, 256], sizes = [8, 128], strides = [1, 1]} : vector<8x384xf32> to vector<8x128xf32>
    %185 = arith.mulf %183, %164 : vector<8x128xf32>
    %186 = arith.mulf %182, %181 : vector<8x128xf32>
    %187 = arith.addf %185, %186 : vector<8x128xf32>
    %188 = math.tanh %187 : vector<8x128xf32>
    %189 = arith.mulf %184, %188 : vector<8x128xf32>
    %c8_i32_56 = arith.constant 8 : i32
    %c0_57 = arith.constant 0 : index
    %c0_58 = arith.constant 0 : index
    %190 = vector.load %arg5[%c0_57, %c0_58] : memref<128x128xf32, #tpu.memory_space<vmem>>, vector<128x128xf32>
    %cst_59 = arith.constant dense<0.000000e+00> : vector<8x128xf32>
    %191 = tpu.matmul %189, %190, %cst_59 {dimension_numbers = #tpu.dot_dimension_numbers<[1], [0], [0], [1], [0, 0, 1, 1], [], []>} : vector<8x128xf32>, vector<128x128xf32>, vector<8x128xf32> -> vector<8x128xf32>
    %c0_60 = arith.constant 0 : index
    %c0_61 = arith.constant 0 : index
    %192 = vector.load %arg6[%c0_60, %c0_61] : memref<8x128xf32, #tpu.memory_space<vmem>>, vector<8x128xf32>
    %193 = arith.addf %191, %192 : vector<8x128xf32>
    %c0_62 = arith.constant 0 : index
    %c0_63 = arith.constant 0 : index
    %194 = vector.load %arg7[%c0_62, %c0_63] : memref<8x128xf32, #tpu.memory_space<vmem>>, vector<8x128xf32>
    tpu.vector_store %arg7[%c0_62, %c0_63], %193 {strides = array<i32>} : memref<8x128xf32, #tpu.memory_space<vmem>>, vector<8x128xf32>,
    return
  }
}

</mosaic_0001>

<bundles_post_ra>
// kernel: _dqn_forward_impl.1
= control target key start
LH: loop header
LB: loop body
LE: loop exit
PB: predicated region body
PF: predicated region fallthrough
CT: control target
= control target key end

     0   :  { %vm38_vm0 = vcmask 64512   ;;  %s3319_s1 = inlined_call_operand.vmem [shape: f32[8,512], index: 1, kind: input, shape index: {}]   ;;  %s3320_s0 = inlined_call_operand.vmem [shape: f32[64,8], index: 0, kind: input, shape index: {}]   ;;  %s3321_s2 = inlined_call_operand.vmem [shape: f32[128,512], index: 2, kind: input, shape index: {}]   ;;  %s3322_s3 = inlined_call_operand.vmem [shape: f32[8,128], index: 3, kind: input, shape index: {}]   ;;  %s3323_s4 = inlined_call_operand.vmem [shape: f32[8,128], index: 4, kind: input, shape index: {}]   ;;  %s3324_s5 = inlined_call_operand.vmem [shape: f32[128,128], index: 5, kind: input, shape index: {}]   ;;  %s3325_s6 = inlined_call_operand.vmem [shape: f32[8,128], index: 6, kind: input, shape index: {}]   ;;  %s3326_s7 = inlined_call_operand.vmem [shape: f32[8,128], index: 7, kind: output, shape index: {}]  }
   0x1   :  { %v34_v0 = vld [vmem:[%s3319_s1] sm:$0xff]  ;;  %v1906_v2 = vld [vmem:[%s3320_s0 + $0x28] sm:$0xff]  ;;  %v1911_v3 = vld [vmem:[%s3320_s0 + $0x30] sm:$0xff] }
   0x2   :  { %v26_v1 = vld [vmem:[%s3320_s0] sm:$0xff]  ;;  %78 = vmatpush.msra.mxu0 %v34_v0  ;;  %1662 = vmatpush.msra.mxu1 %v34_v0  ;;  %v1916_v4 = vld [vmem:[%s3320_s0 + $0x38] sm:$0xff]  ;;  %v35_v5 = vld [vmem:[%s3319_s1 + $0x8] sm:$0xff] }
   0x3   :  { %1663 = vmatpush.msra.mxu2 %v34_v0  ;;  %1664 = vmatpush.msra.mxu3 %v34_v0  ;;  %v36_v6 = vld [vmem:[%s3319_s1 + $0x10] sm:$0xff]  ;;  %v37_v7 = vld [vmem:[%s3319_s1 + $0x18] sm:$0xff]  ;;  %v1933_v8 = vld [vmem:[%s3321_s2 + $0x1e8] sm:$0xff] }
   0x4   :  { %1606 = vmatmul.msk.f32.vlgmr.msra.gmra.mxu0 %vm38_vm0, %v26_v1  ;;  %1611 = vmatmul.msk.f32.vlgmr.msra.gmra.mxu1 %vm38_vm0, %v1906_v2  ;;  %v1942_v9 = vld [vmem:[%s3321_s2 + $0x1e0] sm:$0xff]  ;;  %v1947_v10 = vld [vmem:[%s3321_s2 + $0x1f0] sm:$0xff]  ;;  %v1952_v11 = vld [vmem:[%s3321_s2 + $0x1c8] sm:$0xff] }
   0x5   :  { %1612 = vmatmul.msk.f32.vlgmr.msra.gmra.mxu2 %vm38_vm0, %v1911_v3  ;;  %1613 = vmatmul.msk.f32.vlgmr.msra.gmra.mxu3 %vm38_vm0, %v1916_v4  ;;  %v1958_v12 = vld [vmem:[%s3321_s2 + $0x1c0] sm:$0xff]  ;;  %v1963_v13 = vld [vmem:[%s3321_s2 + $0x1d0] sm:$0xff]  ;;  %v1970_v14 = vld [vmem:[%s3321_s2 + $0x1a8] sm:$0xff] }
   0x6   :  { %119 = vmatpush.msrb.mxu1 %v35_v5  ;;  %160 = vmatpush.msrb.mxu2 %v36_v6  ;;  %v27_v15 = vld [vmem:[%s3320_s0 + $0x8] sm:$0xff]  ;;  %v1979_v16 = vld [vmem:[%s3321_s2 + $0x1f8] sm:$0xff]  ;;  %v1986_v17 = vld [vmem:[%s3321_s2 + $0x1a0] sm:$0xff] }
   0x7   :  { %201 = vmatpush.msrb.mxu3 %v37_v7  ;;  %332 = vmatpush.msrb.mxu0 %v1942_v9  ;;  %v1992_v18 = vld [vmem:[%s3321_s2 + $0x188] sm:$0xff]  ;;  %v2000_v19 = vld [vmem:[%s3321_s2 + $0x1b0] sm:$0xff]  ;;  %v2005_v20 = vld [vmem:[%s3321_s2 + $0x1d8] sm:$0xff] }
   0x8   :  { %352 = vmatpush.msra.mxu1 %v1933_v8  ;;  %372 = vmatpush.msra.mxu2 %v1947_v10  ;;  %v2012_v21 = vld [vmem:[%s3321_s2 + $0x180] sm:$0xff]  ;;  %v2017_v22 = vld [vmem:[%s3321_s2 + $0x168] sm:$0xff]  ;;  %v2024_v23 = vld [vmem:[%s3321_s2 + $0x190] sm:$0xff] }
   0x9   :  { %333 = vmatpush.msrb.mxu0 %v1958_v12  ;;  %392 = vmatpush.msra.mxu3 %v1979_v16  ;;  %v2029_v24 = vld [vmem:[%s3321_s2 + $0x1b8] sm:$0xff]  ;;  %v2034_v25 = vld [vmem:[%s3321_s2 + $0x160] sm:$0xff]  ;;  %v2041_v26 = vld [vmem:[%s3321_s2 + $0x148] sm:$0xff] }
   0xa   :  { %353 = vmatpush.msra.mxu1 %v1952_v11  ;;  %373 = vmatpush.msra.mxu2 %v1963_v13  ;;  %v2048_v27 = vld [vmem:[%s3321_s2 + $0x170] sm:$0xff]  ;;  %v2053_v28 = vld [vmem:[%s3321_s2 + $0x198] sm:$0xff]  ;;  %v2065_v30 = vld [vmem:[%s3321_s2 + $0x140] sm:$0xff] }
   0xb   :  { %334 = vmatpush.msrb.mxu0 %v1986_v17  ;;  %393 = vmatpush.msra.mxu3 %v2005_v20  ;;  %v28_v29 = vld [vmem:[%s3320_s0 + $0x10] sm:$0xff]  ;;  %v2071_v31 = vld [vmem:[%s3321_s2 + $0x128] sm:$0xff]  ;;  %v2084_v33 = vld [vmem:[%s3321_s2 + $0x178] sm:$0xff] }
   0xc   :  { %354 = vmatpush.msra.mxu1 %v1970_v14  ;;  %1607 = vmatmul.msk.f32.gmra.mxu0 %vm38_vm0, %v27_v15  ;;  %v2079_v32 = vld [vmem:[%s3321_s2 + $0x150] sm:$0xff]  ;;  %v2091_v34 = vld [vmem:[%s3321_s2 + $0x120] sm:$0xff]  ;;  %v2096_v35 = vld [vmem:[%s3321_s2 + $0x108] sm:$0xff] }
   0xd   :  { %1614 = vmatmul.msk.f32.vlgmr.msrb.gmra.mxu1 %vm38_vm0, %v26_v1  ;;  %1622 = vmatmul.msk.f32.vlgmr.msrb.gmra.mxu2 %vm38_vm0, %v26_v1  ;;  %v2103_v36 = vld [vmem:[%s3321_s2 + $0x130] sm:$0xff]  ;;  %v2108_v37 = vld [vmem:[%s3321_s2 + $0x158] sm:$0xff]  ;;  %v2113_v38 = vld [vmem:[%s3321_s2 + $0x100] sm:$0xff] }
   0xe   :  { %1630 = vmatmul.msk.f32.vlgmr.msrb.gmra.mxu3 %vm38_vm0, %v26_v1  ;;  %355 = vmatpush.msra.mxu1 %v1992_v18  ;;  %v2120_v39 = vld [vmem:[%s3321_s2 + $0xe8] sm:$0xff]  ;;  %v2127_v40 = vld [vmem:[%s3321_s2 + $0x110] sm:$0xff]  ;;  %v2132_v41 = vld [vmem:[%s3321_s2 + $0x138] sm:$0xff] }
   0xf   :  { %374 = vmatpush.msra.mxu2 %v2000_v19  ;;  %335 = vmatpush.msrb.mxu0 %v2012_v21  ;;  %v29_v42 = vld [vmem:[%s3320_s0 + $0x18] sm:$0xff]  ;;  %v2144_v43 = vld [vmem:[%s3321_s2 + $0xe0] sm:$0xff]  ;;  %v2150_v44 = vld [vmem:[%s3321_s2 + $0xc8] sm:$0xff] }
  0x10   :  { %356 = vmatpush.msra.mxu1 %v2017_v22  ;;  %394 = vmatpush.msra.mxu3 %v2029_v24  ;;  %v2158_v45 = vld [vmem:[%s3321_s2 + $0xf0] sm:$0xff]  ;;  %v2163_v46 = vld [vmem:[%s3321_s2 + $0x118] sm:$0xff]  ;;  %v2170_v47 = vld [vmem:[%s3321_s2 + $0xc0] sm:$0xff] }
  0x11   :  { %375 = vmatpush.msra.mxu2 %v2024_v23  ;;  %336 = vmatpush.msrb.mxu0 %v2034_v25  ;;  %v2175_v48 = vld [vmem:[%s3321_s2 + $0xa8] sm:$0xff]  ;;  %v2182_v49 = vld [vmem:[%s3321_s2 + $0xd0] sm:$0xff]  ;;  %v2187_v50 = vld [vmem:[%s3321_s2 + $0xf8] sm:$0xff] }
  0x12   :  { %357 = vmatpush.msra.mxu1 %v2041_v26  ;;  %395 = vmatpush.msra.mxu3 %v2053_v28  ;;  %3431 = vst [vmem:[#allocation3_spill] sm:$0xff] %v2175_v48  ;;  %v2192_v51 = vld [vmem:[%s3321_s2 + $0xa0] sm:$0xff]  ;;  %v2199_v52 = vld [vmem:[%s3321_s2 + $0x88] sm:$0xff]  ;;  %v2206_v53 = vld [vmem:[%s3321_s2 + $0xb0] sm:$0xff] }
  0x13   :  { %376 = vmatpush.msra.mxu2 %v2048_v27  ;;  %337 = vmatpush.msrb.mxu0 %v2065_v30  ;;  %3432 = vst [vmem:[#allocation4_spill] sm:$0xff] %v2192_v51  ;;  %v2211_v54 = vld [vmem:[%s3321_s2 + $0xd8] sm:$0xff]  ;;  %v2216_v55 = vld [vmem:[%s3321_s2 + $0x80] sm:$0xff]  ;;  %v2237_v58 = vld [vmem:[%s3321_s2 + $0x68] sm:$0xff] }
  0x14   :  { %1608 = vmatmul.msk.f32.gmra.mxu0 %vm38_vm0, %v28_v29  ;;  %358 = vmatpush.msra.mxu1 %v2071_v31  ;;  %3433 = vst [vmem:[#allocation5_spill] sm:$0xff] %v2199_v52  ;;  %v30_v56 = vld [vmem:[%s3320_s0 + $0x20] sm:$0xff]  ;;  %v2242_v59 = vld [vmem:[%s3321_s2 + $0x90] sm:$0xff]  ;;  %v2254_v61 = vld [vmem:[%s3321_s2 + $0xb8] sm:$0xff] }
  0x15   :  { %1615 = vmatmul.msk.f32.gmra.mxu1 %vm38_vm0, %v27_v15  ;;  %1623 = vmatmul.msk.f32.gmra.mxu2 %vm38_vm0, %v27_v15  ;;  %3434 = vst [vmem:[#allocation6_spill] sm:$0xff] %v2206_v53  ;;  %v2228_v57 = vld [vmem:[%s3321_s2 + $0x60] sm:$0xff]  ;;  %v2261_v62 = vld [vmem:[%s3321_s2 + $0x48] sm:$0xff]  ;;  %v2266_v63 = vld [vmem:[%s3321_s2 + $0x70] sm:$0xff] }
  0x16   :  { %1631 = vmatmul.msk.f32.gmra.mxu3 %vm38_vm0, %v27_v15  ;;  %377 = vmatpush.msra.mxu2 %v2079_v32  ;;  %3435 = vst [vmem:[#allocation7_spill] sm:$0xff] %v2216_v55  ;;  %v2249_v60 = vld [vmem:[%s3321_s2 + $0x40] sm:$0xff]  ;;  %v2278_v1 = vld [vmem:[%s3321_s2 + $0x98] sm:$0xff]  ;;  %v2285_v5 = vld [vmem:[%s3321_s2 + $0x28] sm:$0xff] }
  0x17   :  { %396 = vmatpush.msra.mxu3 %v2084_v33  ;;  %338 = vmatpush.msrb.mxu0 %v2091_v34  ;;  %3436 = vst [vmem:[#allocation8_spill] sm:$0xff] %v2228_v57  ;;  %v2271_v0 = vld [vmem:[%s3321_s2 + $0x20] sm:$0xff]  ;;  %v2290_v6 = vld [vmem:[%s3321_s2 + $0x50] sm:$0xff] }
  0x18   :  { %359 = vmatpush.msra.mxu1 %v2096_v35  ;;  %378 = vmatpush.msra.mxu2 %v2103_v36  ;;  %3437 = vst [vmem:[#allocation9_spill] sm:$0xff] %v2237_v58  ;;  %v2295_v7 = vld [vmem:[%s3321_s2] sm:$0xff] }
  0x19   :  { %397 = vmatpush.msra.mxu3 %v2108_v37  ;;  %339 = vmatpush.msrb.mxu0 %v2113_v38  ;;  %3438 = vst [vmem:[#allocation10_spill] sm:$0xff] %v2242_v59  ;;  %v2303_v15 = vld [vmem:[%s3322_s3] sm:$0xff] }
  0x1a   :  { %360 = vmatpush.msra.mxu1 %v2120_v39  ;;  %379 = vmatpush.msra.mxu2 %v2127_v40  ;;  %3439 = vst [vmem:[#allocation11_spill] sm:$0xff] %v2249_v60 }
  0x1b   :  { %398 = vmatpush.msra.mxu3 %v2132_v41  ;;  %340 = vmatpush.msrb.mxu0 %v2144_v43  ;;  %3440 = vst [vmem:[#allocation12_spill] sm:$0xff] %v2254_v61 }
  0x1c   :  { %1609 = vmatmul.msk.f32.gmra.mxu0 %vm38_vm0, %v29_v42  ;;  %361 = vmatpush.msra.mxu1 %v2150_v44  ;;  %3441 = vst [vmem:[#allocation13_spill] sm:$0xff] %v2261_v62 }
  0x1d   :  { %1616 = vmatmul.msk.f32.gmra.mxu1 %vm38_vm0, %v28_v29  ;;  %1624 = vmatmul.msk.f32.gmra.mxu2 %vm38_vm0, %v28_v29  ;;  %3442 = vst [vmem:[#allocation14_spill] sm:$0xff] %v2266_v63 }
  0x1e   :  { %1632 = vmatmul.msk.f32.gmra.mxu3 %vm38_vm0, %v28_v29  ;;  %380 = vmatpush.msra.mxu2 %v2158_v45  ;;  %3443 = vst [vmem:[#allocation15_spill] sm:$0xff] %v2271_v0  ;;  %v2311_v29 = vld [vmem:[%s3321_s2 + $0x8] sm:$0xff] }
  0x1f   :  { %399 = vmatpush.msra.mxu3 %v2163_v46  ;;  %341 = vmatpush.msrb.mxu0 %v2170_v47  ;;  %3444 = vst [vmem:[#allocation16_spill] sm:$0xff] %v2278_v1 }
  0x20   :  { %362 = vmatpush.msra.mxu1 %v2175_v48  ;;  %381 = vmatpush.msra.mxu2 %v2182_v49  ;;  %3445 = vst [vmem:[#allocation17_spill] sm:$0xff] %v2285_v5 }
  0x21   :  { %400 = vmatpush.msra.mxu3 %v2187_v50  ;;  %342 = vmatpush.msrb.mxu0 %v2192_v51  ;;  %3446 = vst [vmem:[#allocation18_spill] sm:$0xff] %v2290_v6 }
  0x22   :  { %363 = vmatpush.msra.mxu1 %v2199_v52  ;;  %382 = vmatpush.msra.mxu2 %v2206_v53  ;;  %3447 = vst [vmem:[#allocation19_spill] sm:$0xff] %v2295_v7 }
  0x23   :  { %401 = vmatpush.msra.mxu3 %v2211_v54  ;;  %343 = vmatpush.msrb.mxu0 %v2216_v55  ;;  %3448 = vst [vmem:[#allocation20_spill] sm:$0xff] %v2311_v29 }
  0x24   :  { %1610 = vmatmul.msk.f32.gmra.mxu0 %vm38_vm0, %v30_v56  ;;  %364 = vmatpush.msra.mxu1 %v2237_v58 }
  0x25   :  { %1617 = vmatmul.msk.f32.gmra.mxu1 %vm38_vm0, %v29_v42  ;;  %1625 = vmatmul.msk.f32.gmra.mxu2 %vm38_vm0, %v29_v42 }
  0x26   :  { %1633 = vmatmul.msk.f32.gmra.mxu3 %vm38_vm0, %v29_v42  ;;  %344 = vmatpush.msrb.mxu0 %v2228_v57  ;;  %v2318_v42 = vld [vmem:[%s3321_s2 + $0x78] sm:$0xff] }
  0x27   :  { %383 = vmatpush.msra.mxu2 %v2242_v59  ;;  %402 = vmatpush.msra.mxu3 %v2254_v61  ;;  %3449 = vst [vmem:[#allocation21_spill] sm:$0xff] %v2318_v42 }
  0x28   :  { %345 = vmatpush.msrb.mxu0 %v2249_v60  ;;  %365 = vmatpush.msra.mxu1 %v2261_v62 }
  0x29   :  { %384 = vmatpush.msra.mxu2 %v2266_v63  ;;  %403 = vmatpush.msra.mxu3 %v2278_v1 }
  0x2a   :  { %346 = vmatpush.msrb.mxu0 %v2271_v0  ;;  %366 = vmatpush.msra.mxu1 %v2285_v5  ;;  %v2323_v5 = vld [vmem:[%s3321_s2 + $0x30] sm:$0xff] }
  0x2b   :  { %385 = vmatpush.msra.mxu2 %v2290_v6  ;;  %3450 = vst [vmem:[#allocation22_spill] sm:$0xff] %v2323_v5  ;;  %v2337_v0 = vld [vmem:[%s3321_s2 + $0x10] sm:$0xff]  ;;  %404 = vmatpush.msra.mxu3 %v2318_v42 }
  0x2c   :  { %347 = vmatpush.msrb.mxu0 %v2295_v7  ;;  %v2331_v7 = vld [vmem:[%s3321_s2 + $0x58] sm:$0xff]  ;;  %367 = vmatpush.msra.mxu1 %v2311_v29  ;;  %3452 = vst [vmem:[#allocation24_spill] sm:$0xff] %v2337_v0 }
  0x2d   :  { %1618 = vmatmul.msk.f32.gmra.mxu1 %vm38_vm0, %v30_v56  ;;  %1626 = vmatmul.msk.f32.gmra.mxu2 %vm38_vm0, %v30_v56  ;;  %3451 = vst [vmem:[#allocation23_spill] sm:$0xff] %v2331_v7  ;;  %v2353_v29 = vld [vmem:[%s3321_s2 + $0x18] sm:$0xff] }
  0x2e   :  { %348 = vmatmul.f32.vlgmr.msrb.gmra.mxu0 %v2303_v15  ;;  %1634 = vmatmul.msk.f32.gmra.mxu3 %vm38_vm0, %v30_v56  ;;  %v2344_v56 = vld [vmem:[%s3321_s2 + $0x38] sm:$0xff]  ;;  %3454 = vst [vmem:[#allocation26_spill] sm:$0xff] %v2353_v29 }
  0x2f   :  { %386 = vmatpush.msra.mxu2 %v2323_v5  ;;  %3453 = vst [vmem:[#allocation25_spill] sm:$0xff] %v2344_v56  ;;  %486 = vmatpush.msra.mxu0 %v1942_v9 }
  0x30   :  { %506 = vmatpush.msrb.mxu1 %v1933_v8  ;;  %405 = vmatpush.msra.mxu3 %v2331_v7 }
  0x31   :  { %387 = vmatpush.msra.mxu2 %v2337_v0  ;;  %487 = vmatpush.msra.mxu0 %v1958_v12 }
  0x32   :  { %406 = vmatpush.msra.mxu3 %v2344_v56  ;;  %507 = vmatpush.msrb.mxu1 %v1952_v11 }
  0x33   :  { %526 = vmatpush.msrb.mxu2 %v1947_v10  ;;  %488 = vmatpush.msra.mxu0 %v1986_v17 }
  0x34   :  { %407 = vmatpush.msra.mxu3 %v2353_v29  ;;  %508 = vmatpush.msrb.mxu1 %v1970_v14 }
  0x35   :  { %1619 = vmatmul.msk.f32.gmra.mxu1 %vm38_vm0, %v1906_v2  ;;  %527 = vmatpush.msrb.mxu2 %v1963_v13 }
  0x36   :  { %1627 = vmatmul.msk.f32.gmra.mxu2 %vm38_vm0, %v1906_v2  ;;  %1635 = vmatmul.msk.f32.gmra.mxu3 %vm38_vm0, %v1906_v2  ;;  %v3455_v2 = vld [vmem:[#allocation15_spill] sm:$0xff] }
  0x37   :  { %546 = vmatpush.msrb.mxu3 %v1979_v16  ;;  %528 = vmatpush.msrb.mxu2 %v2000_v19 }
  0x38   :  { %489 = vmatpush.msra.mxu0 %v2012_v21  ;;  %509 = vmatpush.msrb.mxu1 %v1992_v18 }
  0x39   :  { %547 = vmatpush.msrb.mxu3 %v2005_v20  ;;  %529 = vmatpush.msrb.mxu2 %v2024_v23 }
  0x3a   :  { %490 = vmatpush.msra.mxu0 %v2034_v25  ;;  %510 = vmatpush.msrb.mxu1 %v2017_v22 }
  0x3b   :  { %548 = vmatpush.msrb.mxu3 %v2029_v24  ;;  %530 = vmatpush.msrb.mxu2 %v2048_v27 }
  0x3c   :  { %491 = vmatpush.msra.mxu0 %v2065_v30  ;;  %511 = vmatpush.msrb.mxu1 %v2041_v26 }
  0x3d   :  { %1620 = vmatmul.msk.f32.gmra.mxu1 %vm38_vm0, %v1911_v3  ;;  %549 = vmatpush.msrb.mxu3 %v2053_v28 }
  0x3e   :  { %1628 = vmatmul.msk.f32.gmra.mxu2 %vm38_vm0, %v1911_v3  ;;  %1636 = vmatmul.msk.f32.gmra.mxu3 %vm38_vm0, %v1911_v3  ;;  %v3456_v3 = vld [vmem:[#allocation17_spill] sm:$0xff] }
  0x3f   :  { %550 = vmatpush.msrb.mxu3 %v2084_v33  ;;  %531 = vmatpush.msrb.mxu2 %v2079_v32 }
  0x40   :  { %492 = vmatpush.msra.mxu0 %v2091_v34  ;;  %512 = vmatpush.msrb.mxu1 %v2071_v31 }
  0x41   :  { %551 = vmatpush.msrb.mxu3 %v2108_v37  ;;  %532 = vmatpush.msrb.mxu2 %v2103_v36 }
  0x42   :  { %493 = vmatpush.msra.mxu0 %v2113_v38  ;;  %513 = vmatpush.msrb.mxu1 %v2096_v35 }
  0x43   :  { %552 = vmatpush.msrb.mxu3 %v2132_v41  ;;  %533 = vmatpush.msrb.mxu2 %v2127_v40 }
  0x44   :  { %494 = vmatpush.msra.mxu0 %v2144_v43  ;;  %514 = vmatpush.msrb.mxu1 %v2120_v39 }
  0x45   :  { %1621 = vmatmul.msk.f32.gmra.mxu1 %vm38_vm0, %v1916_v4  ;;  %553 = vmatpush.msrb.mxu3 %v2163_v46 }
  0x46   :  { %1629 = vmatmul.msk.f32.gmra.mxu2 %vm38_vm0, %v1916_v4  ;;  %1637 = vmatmul.msk.f32.gmra.mxu3 %vm38_vm0, %v1916_v4  ;;  %v3457_v4 = vld [vmem:[#allocation19_spill] sm:$0xff] }
  0x47   :  { %534 = vmatpush.msrb.mxu2 %v2158_v45  ;;  %554 = vmatpush.msrb.mxu3 %v2187_v50 }
  0x48   :  { %495 = vmatpush.msra.mxu0 %v2170_v47  ;;  %515 = vmatpush.msrb.mxu1 %v2150_v44 }
  0x49   :  { %535 = vmatpush.msrb.mxu2 %v2182_v49  ;;  %555 = vmatpush.msrb.mxu3 %v2211_v54 }
  0x4a   :  { %496 = vmatpush.msra.mxu0 %v2192_v51  ;;  %516 = vmatpush.msrb.mxu1 %v2175_v48 }
  0x4b   :  { %536 = vmatpush.msrb.mxu2 %v2206_v53  ;;  %556 = vmatpush.msrb.mxu3 %v2254_v61 }
  0x4c   :  { %497 = vmatpush.msra.mxu0 %v2216_v55  ;;  %517 = vmatpush.msrb.mxu1 %v2199_v52 }
  0x4d   :  { %368 = vmatmul.f32.vlgmr.msra.gmra.mxu1 %v2303_v15  ;;  %537 = vmatpush.msrb.mxu2 %v2242_v59 }
  0x4e   :  { %388 = vmatmul.f32.vlgmr.msra.gmra.mxu2 %v2303_v15  ;;  %408 = vmatmul.f32.vlgmr.msra.gmra.mxu3 %v2303_v15  ;;  %v3458_v15 = vld [vmem:[#allocation20_spill] sm:$0xff] }
  0x4f   :  { %557 = vmatpush.msrb.mxu3 %v2278_v1  ;;  %498 = vmatpush.msra.mxu0 %v2228_v57 }
  0x50   :  { %518 = vmatpush.msrb.mxu1 %v2237_v58  ;;  %538 = vmatpush.msrb.mxu2 %v2266_v63 }
  0x51   :  { %558 = vmatpush.msrb.mxu3 %v2318_v42  ;;  %499 = vmatpush.msra.mxu0 %v2249_v60 }
  0x52   :  { %519 = vmatpush.msrb.mxu1 %v2261_v62  ;;  %539 = vmatpush.msrb.mxu2 %v2290_v6 }
  0x53   :  { %559 = vmatpush.msrb.mxu3 %v2331_v7  ;;  %500 = vmatpush.msra.mxu0 %v3455_v2 }
  0x54   :  { %520 = vmatpush.msrb.mxu1 %v3456_v3  ;;  %540 = vmatpush.msrb.mxu2 %v2323_v5 }
  0x55   :  { %560 = vmatpush.msrb.mxu3 %v2344_v56  ;;  %501 = vmatpush.msra.mxu0 %v3457_v4 }
  0x56   :  { %521 = vmatpush.msrb.mxu1 %v3458_v15  ;;  %541 = vmatpush.msrb.mxu2 %v2337_v0 }
  0x57   :  { %561 = vmatpush.msrb.mxu3 %v2353_v29  ;;  %640 = vmatpush.msrb.mxu0 %v1942_v9 }
  0x58   :  { %660 = vmatpush.msra.mxu1 %v1933_v8  ;;  %680 = vmatpush.msra.mxu2 %v1947_v10 }
  0x59   :  { %700 = vmatpush.msra.mxu3 %v1979_v16  ;;  %641 = vmatpush.msrb.mxu0 %v1958_v12 }
  0x5a   :  { %661 = vmatpush.msra.mxu1 %v1952_v11  ;;  %681 = vmatpush.msra.mxu2 %v1963_v13 }
  0x5b   :  { %701 = vmatpush.msra.mxu3 %v2005_v20  ;;  %642 = vmatpush.msrb.mxu0 %v1986_v17 }
  0x5c   :  { %662 = vmatpush.msra.mxu1 %v1970_v14  ;;  %682 = vmatpush.msra.mxu2 %v2000_v19 }
  0x5d   :  { %702 = vmatpush.msra.mxu3 %v2029_v24  ;;  %643 = vmatpush.msrb.mxu0 %v2012_v21 }
  0x5e   :  { %663 = vmatpush.msra.mxu1 %v1992_v18  ;;  %683 = vmatpush.msra.mxu2 %v2024_v23 }
  0x5f   :  { %703 = vmatpush.msra.mxu3 %v2053_v28  ;;  %644 = vmatpush.msrb.mxu0 %v2034_v25 }
  0x60   :  { %664 = vmatpush.msra.mxu1 %v2017_v22  ;;  %684 = vmatpush.msra.mxu2 %v2048_v27 }
  0x61   :  { %704 = vmatpush.msra.mxu3 %v2084_v33  ;;  %645 = vmatpush.msrb.mxu0 %v2065_v30 }
  0x62   :  { %665 = vmatpush.msra.mxu1 %v2041_v26  ;;  %685 = vmatpush.msra.mxu2 %v2079_v32 }
  0x63   :  { %705 = vmatpush.msra.mxu3 %v2108_v37  ;;  %646 = vmatpush.msrb.mxu0 %v2091_v34 }
  0x64   :  { %666 = vmatpush.msra.mxu1 %v2071_v31  ;;  %686 = vmatpush.msra.mxu2 %v2103_v36 }
  0x65   :  { %706 = vmatpush.msra.mxu3 %v2132_v41  ;;  %647 = vmatpush.msrb.mxu0 %v2113_v38 }
  0x66   :  { %667 = vmatpush.msra.mxu1 %v2096_v35  ;;  %687 = vmatpush.msra.mxu2 %v2127_v40 }
  0x67   :  { %707 = vmatpush.msra.mxu3 %v2163_v46  ;;  %648 = vmatpush.msrb.mxu0 %v2144_v43 }
  0x68   :  { %668 = vmatpush.msra.mxu1 %v2120_v39  ;;  %688 = vmatpush.msra.mxu2 %v2158_v45 }
  0x69   :  { %708 = vmatpush.msra.mxu3 %v2187_v50  ;;  %649 = vmatpush.msrb.mxu0 %v2170_v47 }
  0x6a   :  { %669 = vmatpush.msra.mxu1 %v2150_v44  ;;  %689 = vmatpush.msra.mxu2 %v2182_v49 }
  0x6b   :  { %709 = vmatpush.msra.mxu3 %v2211_v54  ;;  %650 = vmatpush.msrb.mxu0 %v2192_v51 }
  0x6c   :  { %670 = vmatpush.msra.mxu1 %v2175_v48  ;;  %690 = vmatpush.msra.mxu2 %v2206_v53 }
  0x6d   :  { %710 = vmatpush.msra.mxu3 %v2254_v61  ;;  %651 = vmatpush.msrb.mxu0 %v2216_v55 }
  0x6e   :  { %671 = vmatpush.msra.mxu1 %v2199_v52  ;;  %691 = vmatpush.msra.mxu2 %v2242_v59 }
  0x6f   :  { %711 = vmatpush.msra.mxu3 %v2278_v1  ;;  %652 = vmatpush.msrb.mxu0 %v2228_v57 }
  0x70   :  { %672 = vmatpush.msra.mxu1 %v2237_v58  ;;  %692 = vmatpush.msra.mxu2 %v2266_v63 }
  0x71   :  { %712 = vmatpush.msra.mxu3 %v2318_v42  ;;  %653 = vmatpush.msrb.mxu0 %v2249_v60 }
  0x72   :  { %673 = vmatpush.msra.mxu1 %v2261_v62  ;;  %693 = vmatpush.msra.mxu2 %v2290_v6 }
  0x73   :  { %713 = vmatpush.msra.mxu3 %v2331_v7  ;;  %654 = vmatpush.msrb.mxu0 %v3455_v2 }
  0x74   :  { %674 = vmatpush.msra.mxu1 %v3456_v3  ;;  %694 = vmatpush.msra.mxu2 %v2323_v5 }
  0x75   :  { %714 = vmatpush.msra.mxu3 %v2344_v56  ;;  %655 = vmatpush.msrb.mxu0 %v3457_v4 }
  0x76   :  { %675 = vmatpush.msra.mxu1 %v3458_v15  ;;  %695 = vmatpush.msra.mxu2 %v2337_v0 }
  0x77   :  { %715 = vmatpush.msra.mxu3 %v2353_v29 }
  0x81   :  { %v80_v62 = vpop.f32.mrf.mxu0  ;;  %v2504_v6 = vpop.f32.mrf.mxu1 }
  0x82   :  { %3459 = vst [vmem:[#allocation27_spill] sm:$0xff] %v2504_v6 }
  0x88   :  { %v2506_v7 = vpop.f32.mrf.mxu2  ;;  %v2508_v2 = vpop.f32.mrf.mxu3 }
  0x89   :  { %3460 = vst [vmem:[#allocation28_spill] sm:$0xff] %v2506_v7  ;;  %v2510_v60 = vpop.f32.mrf.mxu0 }
  0x8a   :  { %3461 = vst [vmem:[#allocation29_spill] sm:$0xff] %v2508_v2  ;;  %v121_v3 = vpop.f32.mrf.mxu1 }
  0x8b   :  { %3462 = vst [vmem:[#allocation30_spill] sm:$0xff] %v2510_v60 }
  0x90   :  { %v162_v5 = vpop.f32.mrf.mxu2 }
  0x91   :  { %v203_v56 = vpop.f32.mrf.mxu3  ;;  %v2514_v4 = vpop.f32.mrf.mxu0 }
  0x92   :  { %v2512_v42 = vpop.f32.mrf.mxu1  ;;  %3464 = vst [vmem:[#allocation32_spill] sm:$0xff] %v2514_v4 }
  0x93   :  { %3463 = vst [vmem:[#allocation31_spill] sm:$0xff] %v2512_v42 }
  0x98   :  { %v2516_v15 = vpop.f32.mrf.mxu2 }
  0x99   :  { %3465 = vst [vmem:[#allocation33_spill] sm:$0xff] %v2516_v15  ;;  %v2518_v0 = vpop.f32.mrf.mxu3  ;;  %v2522_v6 = vpop.f32.mrf.mxu0 }
  0x9a   :  { %3466 = vst [vmem:[#allocation34_spill] sm:$0xff] %v2518_v0  ;;  %v2520_v29 = vpop.f32.mrf.mxu1 }
  0x9b   :  { %3467 = vst [vmem:[#allocation35_spill] sm:$0xff] %v2520_v29 }
  0x9c   :  { %3468 = vst [vmem:[#allocation36_spill] sm:$0xff] %v2522_v6 }
  0xa0   :  { %v2524_v7 = vpop.f32.mrf.mxu2 }
  0xa1   :  { %3469 = vst [vmem:[#allocation37_spill] sm:$0xff] %v2524_v7  ;;  %v2526_v2 = vpop.f32.mrf.mxu3  ;;  %v2530_v60 = vpop.f32.mrf.mxu0 }
  0xa2   :  { %3470 = vst [vmem:[#allocation38_spill] sm:$0xff] %v2526_v2  ;;  %v2528_v63 = vpop.f32.mrf.mxu1 }
  0xa3   :  { %3471 = vst [vmem:[#allocation39_spill] sm:$0xff] %v2528_v63 }
  0xa4   :  { %3472 = vst [vmem:[#allocation40_spill] sm:$0xff] %v2530_v60 }
  0xa8   :  { %v2532_v58 = vpop.f32.mrf.mxu2 }
  0xa9   :  { %3473 = vst [vmem:[#allocation41_spill] sm:$0xff] %v2532_v58  ;;  %v2534_v42 = vpop.f32.mrf.mxu3 }
  0xaa   :  { %3474 = vst [vmem:[#allocation42_spill] sm:$0xff] %v2534_v42  ;;  %v2536_v4 = vpop.f32.mrf.mxu1 }
  0xab   :  { %3475 = vst [vmem:[#allocation43_spill] sm:$0xff] %v2536_v4  ;;  %v349_v6 = vpop.f32.mrf.mxu0 }
  0xac   :  { %v412_v7 = vadd.f32 %v349_v6, %v80_v62 }
  0xae   :  { %v1638_v63 = vmul.f32 -1.442695, %v412_v7 }
  0xb0   :  { %v2538_v15 = vpop.f32.mrf.mxu2  ;;  %1665 = vpow2.f32 %v1638_v63 }
  0xb1   :  { %3476 = vst [vmem:[#allocation44_spill] sm:$0xff] %v2538_v15  ;;  %v2540_v0 = vpop.f32.mrf.mxu3 }
  0xb2   :  { %3477 = vst [vmem:[#allocation45_spill] sm:$0xff] %v2540_v0  ;;  %v2542_v29 = vpop.f32.mrf.mxu1 }
  0xb3   :  { %3478 = vst [vmem:[#allocation46_spill] sm:$0xff] %v2542_v29 }
  0xb6   :  { %v1666_v4 = vpop.eup %1665 }
  0xb7   :  { %v425_v0 = vadd.f32 1.0, %v1666_v4 }
  0xb9   :  { %v2544_v57 = vpop.f32.mrf.mxu2  ;;  %v2548_v60 = vpop.f32.mrf.mxu3  ;;  %1667 = vrcp.f32 %v425_v0  ;;  %vm433_vm2 = vweird.f32 %v425_v0 }
  0xba   :  { %3479 = vst [vmem:[#allocation47_spill] sm:$0xff] %v2544_v57  ;;  %v2546_v2 = vpop.f32.mrf.mxu1 }
  0xbb   :  { %3480 = vst [vmem:[#allocation48_spill] sm:$0xff] %v2546_v2 }
  0xbc   :  { %3481 = vst [vmem:[#allocation49_spill] sm:$0xff] %v2548_v60 }
  0xbf   :  { %v1668_v2 = vpop.eup %1667 }
  0xc0   :  { %v429_v59 = vmul.f32 %v1668_v2, %v425_v0  ;;  %vm434_vm1 = vweird.f32 %v1668_v2 }
  0xc1   :  { %v2550_v58 = vpop.f32.mrf.mxu2  ;;  %v2554_v15 = vpop.f32.mrf.mxu3  ;;  %vm2560_vm4 = vmor %vm433_vm2, %vm434_vm1 }
  0xc2   :  { %3482 = vst [vmem:[#allocation50_spill] sm:$0xff] %v2550_v58  ;;  %v2552_v42 = vpop.f32.mrf.mxu1 }
  0xc3   :  { %3483 = vst [vmem:[#allocation51_spill] sm:$0xff] %v2552_v42 }
  0xc4   :  { %3484 = vst [vmem:[#allocation52_spill] sm:$0xff] %v2554_v15  ;;  %v430_v15 = vsub.f32 1.0, %v429_v59 }
  0xc9   :  { %v2556_v1 = vpop.f32.mrf.mxu2  ;;  %v2558_v57 = vpop.f32.mrf.mxu3 }
  0xca   :  { %3485 = vst [vmem:[#allocation53_spill] sm:$0xff] %v2556_v1  ;;  %v369_v29 = vpop.f32.mrf.mxu1 }
  0xcb   :  { %v413_v62 = vadd.f32 %v369_v29, %v121_v3  ;;  %3486 = vst [vmem:[#allocation54_spill] sm:$0xff] %v2558_v57  ;;  %v431_v29 = vmul.f32 %v1668_v2, %v430_v15 }
  0xcd   :  { %v1639_v6 = vmul.f32 -1.442695, %v413_v62  ;;  %v432_v57 = vadd.f32 %v1668_v2, %v431_v29 }
  0xcf   :  { %1669 = vpow2.f32 %v1639_v6 }
  0xd1   :  { %v389_v7 = vpop.f32.mrf.mxu2  ;;  %v409_v4 = vpop.f32.mrf.mxu3 }
  0xd2   :  { %v414_v63 = vadd.f32 %v389_v7, %v162_v5  ;;  %v415_v1 = vadd.f32 %v409_v4, %v203_v56  ;;  %v439_v7 = vand.u32 2147483648, %v425_v0  ;;  %v436_v56 = vsel %vm2560_vm4, %v1668_v2, %v432_v57 }
  0xd4   :  { %v1640_v60 = vmul.f32 -1.442695, %v414_v63 }
  0xd5   :  { %v1670_v58 = vpop.eup %1669 }
  0xd6   :  { %v426_v42 = vadd.f32 1.0, %v1670_v58  ;;  %1671 = vpow2.f32 %v1640_v60  ;;  %v437_v58 = vand.u32 2147483647, %v425_v0  ;;  %v440_v0 = vor.u32 1.1754944e-38, %v439_v7 }
  0xd8   :  { %1673 = vrcp.f32 %v426_v42  ;;  %v454_v5 = vand.u32 2147483648, %v426_v42  ;;  %v452_v60 = vand.u32 2147483647, %v426_v42  ;;  %vm448_vm5 = vweird.f32 %v426_v42 }
  0xd9   :  { %vm438_vm7 = vcmp.eq.f32.partialorder %v437_v58, 8.507059e+37 }
  0xda   :  { %v455_v4 = vor.u32 1.1754944e-38, %v454_v5  ;;  %vm453_vm8 = vcmp.eq.f32.partialorder %v452_v60, 8.507059e+37  ;;  %v441_v53 = vsel %vm438_vm7, %v440_v0, %v436_v56 }
  0xdc   :  { %v1672_v52 = vpop.eup %1671 }
  0xdd   :  { %v427_v55 = vadd.f32 1.0, %v1672_v52 }
  0xde   :  { %v1674_v3 = vpop.eup %1673 }
  0xdf   :  { %v444_v62 = vmul.f32 %v1674_v3, %v426_v42  ;;  %1675 = vrcp.f32 %v427_v55  ;;  %vm449_vm3 = vweird.f32 %v1674_v3  ;;  %v469_v5 = vand.u32 2147483648, %v427_v55 }
  0xe0   :  { %1677 = vtanh.f32 %v415_v1  ;;  %vm450_vm6 = vmor %vm448_vm5, %vm449_vm3  ;;  %vm463_vm10 = vweird.f32 %v427_v55 }
  0xe1   :  { %v445_v6 = vsub.f32 1.0, %v444_v62  ;;  %v260_v62 = vld [vmem:[%s3323_s4] sm:$0xff]  ;;  %v470_v58 = vor.u32 1.1754944e-38, %v469_v5 }
  0xe3   :  { %v446_v63 = vmul.f32 %v1674_v3, %v445_v6 }
  0xe5   :  { %v1676_v52 = vpop.eup %1675  ;;  %v447_v1 = vadd.f32 %v1674_v3, %v446_v63  ;;  %v467_v63 = vand.u32 2147483647, %v427_v55 }
  0xe6   :  { %v1678_v15 = vpop.eup %1677  ;;  %v459_v29 = vmul.f32 %v1676_v52, %v427_v55  ;;  %vm464_vm9 = vweird.f32 %v1676_v52 }
  0xe7   :  { %v451_v6 = vsel %vm450_vm6, %v1674_v3, %v447_v1  ;;  %v475_v51 = vmul.f32 %v1678_v15, %v441_v53  ;;  %vm465_vm11 = vmor %vm463_vm10, %vm464_vm9  ;;  %vm468_vm12 = vcmp.eq.f32.partialorder %v467_v63, 8.507059e+37 }
  0xe8   :  { %v460_v61 = vsub.f32 1.0, %v459_v29  ;;  %v456_v48 = vsel %vm453_vm8, %v455_v4, %v451_v6 }
  0xe9   :  { %v474_v42 = vmul.f32 %v456_v48, %v260_v62 }
  0xea   :  { %v461_v59 = vmul.f32 %v1676_v52, %v460_v61  ;;  %v3515_v61 = vld [vmem:[#allocation33_spill] sm:$0xff] }
  0xeb   :  { %v2569_v57 = vadd.f32 %v475_v51, %v474_v42 }
  0xec   :  { %v462_v2 = vadd.f32 %v1676_v52, %v461_v59 }
  0xed   :  { %1679 = vtanh.f32 %v2569_v57 }
  0xee   :  { %v466_v7 = vsel %vm465_vm11, %v1676_v52, %v462_v2  ;;  %v3516_v2 = vld [vmem:[#allocation34_spill] sm:$0xff] }
  0xef   :  { %v471_v60 = vsel %vm468_vm12, %v470_v58, %v466_v7 }
  0xf3   :  { %v1680_v3 = vpop.eup %1679 }
  0xf4   :  { %v478_v56 = vmul.f32 %v1680_v3, %v471_v60 }
  0xf6   :  { %502 = vmatmul.f32.vlgmr.msra.gmra.mxu0 %v478_v56  ;;  %522 = vmatmul.f32.vlgmr.msrb.gmra.mxu1 %v478_v56 }
  0xf7   :  { %542 = vmatmul.f32.vlgmr.msrb.gmra.mxu2 %v478_v56  ;;  %562 = vmatmul.f32.vlgmr.msrb.gmra.mxu3 %v478_v56 }
  0xf8   :  { %794 = vmatpush.msra.mxu0 %v1942_v9  ;;  %814 = vmatpush.msrb.mxu1 %v1933_v8  ;;  %v3489_v8 = vld [vmem:[#allocation4_spill] sm:$0xff]  ;;  %v3490_v9 = vld [vmem:[#allocation3_spill] sm:$0xff] }
  0xf9   :  { %834 = vmatpush.msrb.mxu2 %v1947_v10  ;;  %854 = vmatpush.msrb.mxu3 %v1979_v16  ;;  %v3491_v10 = vld [vmem:[#allocation6_spill] sm:$0xff]  ;;  %v3496_v16 = vld [vmem:[#allocation16_spill] sm:$0xff] }
  0xfa   :  { %795 = vmatpush.msra.mxu0 %v1958_v12  ;;  %815 = vmatpush.msrb.mxu1 %v1952_v11  ;;  %v3492_v11 = vld [vmem:[#allocation12_spill] sm:$0xff]  ;;  %v3493_v12 = vld [vmem:[#allocation7_spill] sm:$0xff] }
  0xfb   :  { %835 = vmatpush.msrb.mxu2 %v1963_v13  ;;  %855 = vmatpush.msrb.mxu3 %v2005_v20  ;;  %v3494_v13 = vld [vmem:[#allocation5_spill] sm:$0xff] }
  0xfc   :  { %796 = vmatpush.msra.mxu0 %v1986_v17  ;;  %816 = vmatpush.msrb.mxu1 %v1970_v14  ;;  %v3495_v14 = vld [vmem:[#allocation10_spill] sm:$0xff]  ;;  %v3497_v17 = vld [vmem:[#allocation8_spill] sm:$0xff]  ;;  %v3500_v20 = vld [vmem:[#allocation21_spill] sm:$0xff] }
  0xfd   :  { %836 = vmatpush.msrb.mxu2 %v2000_v19  ;;  %856 = vmatpush.msrb.mxu3 %v2029_v24  ;;  %v3499_v19 = vld [vmem:[#allocation14_spill] sm:$0xff]  ;;  %v3504_v24 = vld [vmem:[#allocation23_spill] sm:$0xff] }
  0xfe   :  { %797 = vmatpush.msra.mxu0 %v2012_v21  ;;  %817 = vmatpush.msrb.mxu1 %v1992_v18  ;;  %v3498_v18 = vld [vmem:[#allocation9_spill] sm:$0xff]  ;;  %v3501_v21 = vld [vmem:[#allocation11_spill] sm:$0xff] }
  0xff   :  { %837 = vmatpush.msrb.mxu2 %v2024_v23  ;;  %857 = vmatpush.msrb.mxu3 %v2053_v28  ;;  %v3503_v23 = vld [vmem:[#allocation18_spill] sm:$0xff]  ;;  %v3508_v28 = vld [vmem:[#allocation25_spill] sm:$0xff] }
 0x100   :  { %798 = vmatpush.msra.mxu0 %v2034_v25  ;;  %818 = vmatpush.msrb.mxu1 %v2017_v22  ;;  %v3502_v22 = vld [vmem:[#allocation13_spill] sm:$0xff]  ;;  %v3505_v25 = vld [vmem:[#allocation15_spill] sm:$0xff] }
 0x101   :  { %838 = vmatpush.msrb.mxu2 %v2048_v27  ;;  %858 = vmatpush.msrb.mxu3 %v2084_v33  ;;  %v3507_v27 = vld [vmem:[#allocation22_spill] sm:$0xff] }
 0x102   :  { %799 = vmatpush.msra.mxu0 %v2065_v30  ;;  %819 = vmatpush.msrb.mxu1 %v2041_v26  ;;  %v3506_v26 = vld [vmem:[#allocation17_spill] sm:$0xff]  ;;  %v3509_v30 = vld [vmem:[#allocation19_spill] sm:$0xff]  ;;  %v3512_v33 = vld [vmem:[#allocation26_spill] sm:$0xff] }
 0x103   :  { %839 = vmatpush.msrb.mxu2 %v2079_v32  ;;  %859 = vmatpush.msrb.mxu3 %v2108_v37  ;;  %v3511_v32 = vld [vmem:[#allocation24_spill] sm:$0xff] }
 0x104   :  { %800 = vmatpush.msra.mxu0 %v2091_v34  ;;  %820 = vmatpush.msrb.mxu1 %v2071_v31  ;;  %v3510_v31 = vld [vmem:[#allocation20_spill] sm:$0xff] }
 0x105   :  { %840 = vmatpush.msrb.mxu2 %v2103_v36  ;;  %860 = vmatpush.msrb.mxu3 %v2132_v41  ;;  %v3513_v36 = vld [vmem:[#allocation30_spill] sm:$0xff] }
 0x106   :  { %801 = vmatpush.msra.mxu0 %v2113_v38  ;;  %821 = vmatpush.msrb.mxu1 %v2096_v35 }
 0x107   :  { %841 = vmatpush.msrb.mxu2 %v2127_v40  ;;  %861 = vmatpush.msrb.mxu3 %v2163_v46 }
 0x108   :  { %802 = vmatpush.msra.mxu0 %v2144_v43  ;;  %822 = vmatpush.msrb.mxu1 %v2120_v39  ;;  %v3514_v39 = vld [vmem:[#allocation31_spill] sm:$0xff] }
 0x109   :  { %842 = vmatpush.msrb.mxu2 %v2158_v45  ;;  %862 = vmatpush.msrb.mxu3 %v2187_v50 }
 0x10a   :  { %803 = vmatpush.msra.mxu0 %v2170_v47  ;;  %823 = vmatpush.msrb.mxu1 %v2150_v44 }
 0x10b   :  { %843 = vmatpush.msrb.mxu2 %v2182_v49  ;;  %863 = vmatpush.msrb.mxu3 %v2211_v54 }
 0x10c   :  { %804 = vmatpush.msra.mxu0 %v3489_v8  ;;  %824 = vmatpush.msrb.mxu1 %v3490_v9 }
 0x10d   :  { %844 = vmatpush.msrb.mxu2 %v3491_v10  ;;  %864 = vmatpush.msrb.mxu3 %v3492_v11 }
 0x10e   :  { %805 = vmatpush.msra.mxu0 %v3493_v12  ;;  %825 = vmatpush.msrb.mxu1 %v3494_v13 }
 0x10f   :  { %845 = vmatpush.msrb.mxu2 %v3495_v14  ;;  %865 = vmatpush.msrb.mxu3 %v3496_v16 }
 0x110   :  { %806 = vmatpush.msra.mxu0 %v3497_v17  ;;  %826 = vmatpush.msrb.mxu1 %v3498_v18 }
 0x111   :  { %846 = vmatpush.msrb.mxu2 %v3499_v19  ;;  %866 = vmatpush.msrb.mxu3 %v3500_v20 }
 0x112   :  { %807 = vmatpush.msra.mxu0 %v3501_v21  ;;  %827 = vmatpush.msrb.mxu1 %v3502_v22 }
 0x113   :  { %847 = vmatpush.msrb.mxu2 %v3503_v23  ;;  %867 = vmatpush.msrb.mxu3 %v3504_v24 }
 0x114   :  { %808 = vmatpush.msra.mxu0 %v3505_v25  ;;  %828 = vmatpush.msrb.mxu1 %v3506_v26 }
 0x115   :  { %848 = vmatpush.msrb.mxu2 %v3507_v27  ;;  %868 = vmatpush.msrb.mxu3 %v3508_v28 }
 0x116   :  { %809 = vmatpush.msra.mxu0 %v3509_v30  ;;  %829 = vmatpush.msrb.mxu1 %v3510_v31 }
 0x117   :  { %849 = vmatpush.msrb.mxu2 %v3511_v32  ;;  %869 = vmatpush.msrb.mxu3 %v3512_v33 }
 0x173   :  { %v503_v34 = vpop.f32.mrf.mxu0  ;;  %v523_v35 = vpop.f32.mrf.mxu1 }
 0x174   :  { %v566_v38 = vadd.f32 %v503_v34, %v3513_v36  ;;  %v567_v48 = vadd.f32 %v523_v35, %v3514_v39 }
 0x176   :  { %v1641_v51 = vmul.f32 -1.442695, %v566_v38  ;;  %v1642_v53 = vmul.f32 -1.442695, %v567_v48 }
 0x178   :  { %1681 = vpow2.f32 %v1641_v51 }
 0x179   :  { %1683 = vpow2.f32 %v1642_v53 }
 0x17a   :  { %v543_v55 = vpop.f32.mrf.mxu2  ;;  %v563_v0 = vpop.f32.mrf.mxu3 }
 0x17b   :  { %v568_v52 = vadd.f32 %v543_v55, %v3515_v61  ;;  %v569_v5 = vadd.f32 %v563_v0, %v3516_v2 }
 0x17d   :  { %v1643_v1 = vmul.f32 -1.442695, %v568_v52 }
 0x17e   :  { %v1682_v15 = vpop.eup %1681 }
 0x17f   :  { %v1684_v4 = vpop.eup %1683  ;;  %v579_v29 = vadd.f32 1.0, %v1682_v15  ;;  %1685 = vpow2.f32 %v1643_v1 }
 0x180   :  { %v580_v62 = vadd.f32 1.0, %v1684_v4 }
 0x181   :  { %1687 = vrcp.f32 %v579_v29  ;;  %v593_v56 = vand.u32 2147483648, %v579_v29  ;;  %v591_v36 = vand.u32 2147483647, %v579_v29  ;;  %vm587_vm15 = vweird.f32 %v579_v29 }
 0x182   :  { %1689 = vrcp.f32 %v580_v62  ;;  %v608_v34 = vand.u32 2147483648, %v580_v62  ;;  %v606_v39 = vand.u32 2147483647, %v580_v62  ;;  %vm602_vm0 = vweird.f32 %v580_v62 }
 0x183   :  { %v594_v55 = vor.u32 1.1754944e-38, %v593_v56  ;;  %vm592_vm3 = vcmp.eq.f32.partialorder %v591_v36, 8.507059e+37  ;;  %v2659_v36 = vld [vmem:[%s3321_s2 + $0x1f0] sm:$0xff] }
 0x184   :  { %v609_v52 = vor.u32 1.1754944e-38, %v608_v34  ;;  %vm607_vm4 = vcmp.eq.f32.partialorder %v606_v39, 8.507059e+37  ;;  %v2671_v39 = vld [vmem:[%s3321_s2 + $0x1c0] sm:$0xff] }
 0x185   :  { %v1686_v6 = vpop.eup %1685 }
 0x186   :  { %v581_v42 = vadd.f32 1.0, %v1686_v6 }
 0x187   :  { %v1688_v59 = vpop.eup %1687 }
 0x188   :  { %v1690_v63 = vpop.eup %1689  ;;  %v583_v7 = vmul.f32 %v1688_v59, %v579_v29  ;;  %1691 = vrcp.f32 %v581_v42  ;;  %vm588_vm13 = vweird.f32 %v1688_v59  ;;  %vm617_vm6 = vweird.f32 %v581_v42 }
 0x189   :  { %v598_v58 = vmul.f32 %v1690_v63, %v580_v62  ;;  %1693 = vtanh.f32 %v569_v5  ;;  %vm603_vm14 = vweird.f32 %v1690_v63  ;;  %vm589_vm1 = vmor %vm587_vm15, %vm588_vm13 }
 0x18a   :  { %v584_v3 = vsub.f32 1.0, %v583_v7  ;;  %vm604_vm2 = vmor %vm602_vm0, %vm603_vm14 }
 0x18b   :  { %v599_v60 = vsub.f32 1.0, %v598_v58 }
 0x18c   :  { %v585_v35 = vmul.f32 %v1688_v59, %v584_v3  ;;  %v623_v3 = vand.u32 2147483648, %v581_v42 }
 0x18d   :  { %v600_v38 = vmul.f32 %v1690_v63, %v599_v60 }
 0x18e   :  { %v1692_v48 = vpop.eup %1691  ;;  %v586_v51 = vadd.f32 %v1688_v59, %v585_v35  ;;  %v624_v56 = vor.u32 1.1754944e-38, %v623_v3  ;;  %v2773_v3 = vld [vmem:[%s3321_s2 + $0x148] sm:$0xff] }
 0x18f   :  { %v613_v53 = vmul.f32 %v1692_v48, %v581_v42  ;;  %v601_v61 = vadd.f32 %v1690_v63, %v600_v38  ;;  %v1694_v15 = vpop.eup %1693  ;;  %vm618_vm5 = vweird.f32 %v1692_v48  ;;  %v2665_v38 = vld [vmem:[%s3321_s2 + $0x1f8] sm:$0xff] }
 0x190   :  { %v590_v1 = vsel %vm589_vm1, %v1688_v59, %v586_v51  ;;  %v621_v59 = vand.u32 2147483647, %v581_v42  ;;  %vm619_vm7 = vmor %vm617_vm6, %vm618_vm5  ;;  %v2653_v42 = vld [vmem:[%s3321_s2 + $0x1e8] sm:$0xff]  ;;  %v2683_v51 = vld [vmem:[%s3321_s2 + $0x1d0] sm:$0xff] }
 0x191   :  { %v614_v4 = vsub.f32 1.0, %v613_v53  ;;  %v595_v0 = vsel %vm592_vm3, %v594_v55, %v590_v1  ;;  %v605_v6 = vsel %vm604_vm2, %v1690_v63, %v601_v61  ;;  %v2689_v53 = vld [vmem:[%s3321_s2 + $0x1d8] sm:$0xff]  ;;  %v2695_v55 = vld [vmem:[%s3321_s2 + $0x1a0] sm:$0xff]  ;;  %v2701_v61 = vld [vmem:[%s3321_s2 + $0x1a8] sm:$0xff] }
 0x192   :  { %v610_v2 = vsel %vm607_vm4, %v609_v52, %v605_v6  ;;  %v629_v5 = vmul.f32 %v1694_v15, %v595_v0  ;;  %vm622_vm8 = vcmp.eq.f32.partialorder %v621_v59, 8.507059e+37  ;;  %v2707_v52 = vld [vmem:[%s3321_s2 + $0x1b0] sm:$0xff]  ;;  %v2713_v1 = vld [vmem:[%s3321_s2 + $0x1b8] sm:$0xff]  ;;  %v2719_v15 = vld [vmem:[%s3321_s2 + $0x180] sm:$0xff] }
 0x193   :  { %v628_v7 = vmul.f32 %v610_v2, %v2569_v57  ;;  %v615_v58 = vmul.f32 %v1692_v48, %v614_v4  ;;  %v2647_v57 = vld [vmem:[%s3321_s2 + $0x1e0] sm:$0xff]  ;;  %v2725_v4 = vld [vmem:[%s3321_s2 + $0x188] sm:$0xff]  ;;  %v2731_v0 = vld [vmem:[%s3321_s2 + $0x190] sm:$0xff] }
 0x194   :  { %v2737_v6 = vld [vmem:[%s3321_s2 + $0x198] sm:$0xff]  ;;  %v2743_v2 = vld [vmem:[%s3321_s2 + $0x160] sm:$0xff]  ;;  %v2779_v59 = vld [vmem:[%s3321_s2 + $0x150] sm:$0xff] }
 0x195   :  { %v2641_v29 = vadd.f32 %v629_v5, %v628_v7  ;;  %v616_v62 = vadd.f32 %v1692_v48, %v615_v58  ;;  %v2749_v5 = vld [vmem:[%s3321_s2 + $0x168] sm:$0xff]  ;;  %v2755_v7 = vld [vmem:[%s3321_s2 + $0x170] sm:$0xff]  ;;  %v2761_v58 = vld [vmem:[%s3321_s2 + $0x178] sm:$0xff] }
 0x197   :  { %1695 = vtanh.f32 %v2641_v29  ;;  %v620_v60 = vsel %vm619_vm7, %v1692_v48, %v616_v62  ;;  %v2677_v48 = vld [vmem:[%s3321_s2 + $0x1c8] sm:$0xff]  ;;  %v2767_v62 = vld [vmem:[%s3321_s2 + $0x140] sm:$0xff] }
 0x198   :  { %v625_v34 = vsel %vm622_vm8, %v624_v56, %v620_v60  ;;  %v2786_v60 = vld [vmem:[%s3321_s2 + $0x120] sm:$0xff]  ;;  %v2792_v56 = vld [vmem:[%s3321_s2 + $0x128] sm:$0xff] }
 0x19d   :  { %v1696_v63 = vpop.eup %1695 }
 0x19e   :  { %v632_v35 = vmul.f32 %v1696_v63, %v625_v34  ;;  %v2798_v63 = vld [vmem:[%s3321_s2 + $0x130] sm:$0xff]  ;;  %v2811_v34 = vld [vmem:[%s3321_s2 + $0x108] sm:$0xff] }
 0x1a0   :  { %656 = vmatmul.f32.vlgmr.msrb.gmra.mxu0 %v632_v35  ;;  %676 = vmatmul.f32.vlgmr.msra.gmra.mxu1 %v632_v35 }
 0x1a1   :  { %696 = vmatmul.f32.vlgmr.msra.gmra.mxu2 %v632_v35  ;;  %716 = vmatmul.f32.vlgmr.msra.gmra.mxu3 %v632_v35 }
 0x1a2   :  { %948 = vmatpush.msrb.mxu0 %v2647_v57  ;;  %968 = vmatpush.msra.mxu1 %v2653_v42 }
 0x1a3   :  { %988 = vmatpush.msra.mxu2 %v2659_v36  ;;  %1008 = vmatpush.msra.mxu3 %v2665_v38 }
 0x1a4   :  { %949 = vmatpush.msrb.mxu0 %v2671_v39  ;;  %969 = vmatpush.msra.mxu1 %v2677_v48 }
 0x1a5   :  { %989 = vmatpush.msra.mxu2 %v2683_v51  ;;  %1009 = vmatpush.msra.mxu3 %v2689_v53 }
 0x1a6   :  { %950 = vmatpush.msrb.mxu0 %v2695_v55  ;;  %970 = vmatpush.msra.mxu1 %v2701_v61 }
 0x1a7   :  { %990 = vmatpush.msra.mxu2 %v2707_v52  ;;  %1010 = vmatpush.msra.mxu3 %v2713_v1 }
 0x1a8   :  { %951 = vmatpush.msrb.mxu0 %v2719_v15  ;;  %971 = vmatpush.msra.mxu1 %v2725_v4 }
 0x1a9   :  { %991 = vmatpush.msra.mxu2 %v2731_v0  ;;  %1011 = vmatpush.msra.mxu3 %v2737_v6 }
 0x1aa   :  { %952 = vmatpush.msrb.mxu0 %v2743_v2  ;;  %972 = vmatpush.msra.mxu1 %v2749_v5 }
 0x1ab   :  { %992 = vmatpush.msra.mxu2 %v2755_v7  ;;  %1012 = vmatpush.msra.mxu3 %v2761_v58 }
 0x1ac   :  { %953 = vmatpush.msrb.mxu0 %v2767_v62  ;;  %973 = vmatpush.msra.mxu1 %v2773_v3 }
 0x1ad   :  { %993 = vmatpush.msra.mxu2 %v2779_v59  ;;  %1013 = vmatpush.msra.mxu3 %v2108_v37  ;;  %v2805_v37 = vld [vmem:[%s3321_s2 + $0x100] sm:$0xff] }
 0x1ae   :  { %954 = vmatpush.msrb.mxu0 %v2786_v60  ;;  %974 = vmatpush.msra.mxu1 %v2792_v56 }
 0x1af   :  { %994 = vmatpush.msra.mxu2 %v2798_v63  ;;  %1014 = vmatpush.msra.mxu3 %v2132_v41  ;;  %v2820_v41 = vld [vmem:[%s3321_s2 + $0xe8] sm:$0xff] }
 0x1b0   :  { %955 = vmatpush.msrb.mxu0 %v2805_v37  ;;  %975 = vmatpush.msra.mxu1 %v2811_v34 }
 0x1b1   :  { %995 = vmatpush.msra.mxu2 %v2127_v40  ;;  %1015 = vmatpush.msra.mxu3 %v2163_v46  ;;  %v3518_v46 = vld [vmem:[#allocation35_spill] sm:$0xff] }
 0x1b2   :  { %956 = vmatpush.msrb.mxu0 %v2144_v43  ;;  %976 = vmatpush.msra.mxu1 %v2820_v41 }
 0x1b3   :  { %996 = vmatpush.msra.mxu2 %v2158_v45  ;;  %1016 = vmatpush.msra.mxu3 %v2187_v50 }
 0x1b4   :  { %957 = vmatpush.msrb.mxu0 %v2170_v47  ;;  %977 = vmatpush.msra.mxu1 %v2150_v44  ;;  %v3517_v44 = vld [vmem:[#allocation32_spill] sm:$0xff] }
 0x1b5   :  { %997 = vmatpush.msra.mxu2 %v2182_v49  ;;  %1017 = vmatpush.msra.mxu3 %v2211_v54 }
 0x1b6   :  { %958 = vmatpush.msrb.mxu0 %v3489_v8  ;;  %978 = vmatpush.msra.mxu1 %v3490_v9  ;;  %v3519_v8 = vld [vmem:[#allocation37_spill] sm:$0xff] }
 0x1b7   :  { %998 = vmatpush.msra.mxu2 %v3491_v10  ;;  %1018 = vmatpush.msra.mxu3 %v3492_v11 }
 0x1b8   :  { %959 = vmatpush.msrb.mxu0 %v3493_v12  ;;  %979 = vmatpush.msra.mxu1 %v3494_v13 }
 0x1b9   :  { %999 = vmatpush.msra.mxu2 %v3495_v14  ;;  %1019 = vmatpush.msra.mxu3 %v3496_v16 }
 0x1ba   :  { %960 = vmatpush.msrb.mxu0 %v3497_v17  ;;  %980 = vmatpush.msra.mxu1 %v3498_v18 }
 0x1bb   :  { %1000 = vmatpush.msra.mxu2 %v3499_v19  ;;  %1020 = vmatpush.msra.mxu3 %v3500_v20  ;;  %v3520_v20 = vld [vmem:[#allocation38_spill] sm:$0xff] }
 0x1bc   :  { %961 = vmatpush.msrb.mxu0 %v3501_v21  ;;  %981 = vmatpush.msra.mxu1 %v3502_v22 }
 0x1bd   :  { %1001 = vmatpush.msra.mxu2 %v3503_v23  ;;  %1021 = vmatpush.msra.mxu3 %v3504_v24 }
 0x1be   :  { %962 = vmatpush.msrb.mxu0 %v3505_v25  ;;  %982 = vmatpush.msra.mxu1 %v3506_v26 }
 0x1bf   :  { %1002 = vmatpush.msra.mxu2 %v3507_v27  ;;  %1022 = vmatpush.msra.mxu3 %v3508_v28 }
 0x1c0   :  { %963 = vmatpush.msrb.mxu0 %v3509_v30  ;;  %983 = vmatpush.msra.mxu1 %v3510_v31 }
 0x1c1   :  { %1003 = vmatpush.msra.mxu2 %v3511_v32  ;;  %1023 = vmatpush.msra.mxu3 %v3512_v33 }
 0x21d   :  { %v657_v40 = vpop.f32.mrf.mxu0  ;;  %v677_v43 = vpop.f32.mrf.mxu1 }
 0x21e   :  { %v720_v45 = vadd.f32 %v657_v40, %v3517_v44  ;;  %v721_v47 = vadd.f32 %v677_v43, %v3518_v46 }
 0x220   :  { %v1644_v49 = vmul.f32 -1.442695, %v720_v45  ;;  %v1645_v50 = vmul.f32 -1.442695, %v721_v47 }
 0x222   :  { %1697 = vpow2.f32 %v1644_v49 }
 0x223   :  { %1699 = vpow2.f32 %v1645_v50 }
 0x224   :  { %v697_v54 = vpop.f32.mrf.mxu2  ;;  %v717_v16 = vpop.f32.mrf.mxu3 }
 0x225   :  { %v722_v9 = vadd.f32 %v697_v54, %v3519_v8  ;;  %v723_v21 = vadd.f32 %v717_v16, %v3520_v20 }
 0x227   :  { %v1646_v10 = vmul.f32 -1.442695, %v722_v9 }
 0x228   :  { %v1698_v11 = vpop.eup %1697 }
 0x229   :  { %v1700_v12 = vpop.eup %1699  ;;  %v733_v13 = vadd.f32 1.0, %v1698_v11  ;;  %1701 = vpow2.f32 %v1646_v10 }
 0x22a   :  { %v734_v14 = vadd.f32 1.0, %v1700_v12 }
 0x22b   :  { %1703 = vrcp.f32 %v733_v13  ;;  %v747_v27 = vand.u32 2147483648, %v733_v13  ;;  %v745_v31 = vand.u32 2147483647, %v733_v13  ;;  %vm741_vm11 = vweird.f32 %v733_v13 }
 0x22c   :  { %1705 = vrcp.f32 %v734_v14  ;;  %v762_v28 = vand.u32 2147483648, %v734_v14  ;;  %v760_v33 = vand.u32 2147483647, %v734_v14  ;;  %vm756_vm12 = vweird.f32 %v734_v14 }
 0x22d   :  { %v748_v44 = vor.u32 1.1754944e-38, %v747_v27  ;;  %vm746_vm15 = vcmp.eq.f32.partialorder %v745_v31, 8.507059e+37  ;;  %v2923_v27 = vld [vmem:[%s3321_s2 + $0xf0] sm:$0xff]  ;;  %v2941_v31 = vld [vmem:[%s3321_s2 + $0xc8] sm:$0xff] }
 0x22e   :  { %v763_v46 = vor.u32 1.1754944e-38, %v762_v28  ;;  %vm761_vm0 = vcmp.eq.f32.partialorder %v760_v33, 8.507059e+37  ;;  %v2929_v28 = vld [vmem:[%s3321_s2 + $0xf8] sm:$0xff] }
 0x22f   :  { %v1702_v17 = vpop.eup %1701  ;;  %v2953_v33 = vld [vmem:[%s3321_s2 + $0xd8] sm:$0xff] }
 0x230   :  { %v735_v18 = vadd.f32 1.0, %v1702_v17  ;;  %3522 = vst [vmem:[#allocation3_spill] sm:$0xff] %v2953_v33 }
 0x231   :  { %v1704_v19 = vpop.eup %1703 }
 0x232   :  { %v1706_v22 = vpop.eup %1705  ;;  %v737_v23 = vmul.f32 %v1704_v19, %v733_v13  ;;  %1707 = vrcp.f32 %v735_v18  ;;  %vm742_vm9 = vweird.f32 %v1704_v19  ;;  %v777_v16 = vand.u32 2147483648, %v735_v18 }
 0x233   :  { %v752_v24 = vmul.f32 %v1706_v22, %v734_v14  ;;  %1709 = vtanh.f32 %v723_v21  ;;  %vm757_vm10 = vweird.f32 %v1706_v22  ;;  %vm743_vm13 = vmor %vm741_vm11, %vm742_vm9  ;;  %vm771_vm2 = vweird.f32 %v735_v18 }
 0x234   :  { %v738_v25 = vsub.f32 1.0, %v737_v23  ;;  %vm758_vm14 = vmor %vm756_vm12, %vm757_vm10  ;;  %v775_v17 = vand.u32 2147483647, %v735_v18  ;;  %v778_v20 = vor.u32 1.1754944e-38, %v777_v16  ;;  %v3055_v16 = vld [vmem:[%s3321_s2 + $0x20] sm:$0xff] }
 0x235   :  { %v753_v26 = vsub.f32 1.0, %v752_v24  ;;  %v2904_v24 = vld [vmem:[%s3321_s2 + $0x110] sm:$0xff]  ;;  %3539 = vst [vmem:[#allocation22_spill] sm:$0xff] %v3055_v16 }
 0x236   :  { %v739_v30 = vmul.f32 %v1704_v19, %v738_v25  ;;  %vm776_vm4 = vcmp.eq.f32.partialorder %v775_v17, 8.507059e+37  ;;  %v2910_v25 = vld [vmem:[%s3321_s2 + $0x118] sm:$0xff]  ;;  %v3061_v17 = vld [vmem:[%s3321_s2 + $0x28] sm:$0xff] }
 0x237   :  { %v754_v32 = vmul.f32 %v1706_v22, %v753_v26  ;;  %v2916_v26 = vld [vmem:[%s3321_s2 + $0xe0] sm:$0xff]  ;;  %3540 = vst [vmem:[#allocation25_spill] sm:$0xff] %v3061_v17 }
 0x238   :  { %v1708_v35 = vpop.eup %1707  ;;  %v740_v40 = vadd.f32 %v1704_v19, %v739_v30  ;;  %v2935_v30 = vld [vmem:[%s3321_s2 + $0xc0] sm:$0xff] }
 0x239   :  { %v767_v43 = vmul.f32 %v1708_v35, %v735_v18  ;;  %v755_v45 = vadd.f32 %v1706_v22, %v754_v32  ;;  %v1710_v49 = vpop.eup %1709  ;;  %vm772_vm1 = vweird.f32 %v1708_v35  ;;  %v2896_v18 = vld [vmem:[%s3321_s2 + $0x138] sm:$0xff]  ;;  %v2947_v32 = vld [vmem:[%s3321_s2 + $0xd0] sm:$0xff] }
 0x23a   :  { %v744_v47 = vsel %vm743_vm13, %v1704_v19, %v740_v40  ;;  %vm773_vm3 = vmor %vm771_vm2, %vm772_vm1  ;;  %3521 = vst [vmem:[#allocation4_spill] sm:$0xff] %v2947_v32  ;;  %v2965_v40 = vld [vmem:[%s3321_s2 + $0xa8] sm:$0xff] }
 0x23b   :  { %v768_v50 = vsub.f32 1.0, %v767_v43  ;;  %v749_v54 = vsel %vm746_vm15, %v748_v44, %v744_v47  ;;  %v759_v8 = vsel %vm758_vm14, %v1706_v22, %v755_v45  ;;  %3524 = vst [vmem:[#allocation12_spill] sm:$0xff] %v2965_v40  ;;  %v2971_v43 = vld [vmem:[%s3321_s2 + $0xb0] sm:$0xff]  ;;  %v2977_v44 = vld [vmem:[%s3321_s2 + $0xb8] sm:$0xff]  ;;  %v2983_v45 = vld [vmem:[%s3321_s2 + $0x80] sm:$0xff] }
 0x23c   :  { %v764_v9 = vsel %vm761_vm0, %v763_v46, %v759_v8  ;;  %v783_v10 = vmul.f32 %v1710_v49, %v749_v54  ;;  %3525 = vst [vmem:[#allocation7_spill] sm:$0xff] %v2971_v43  ;;  %v2989_v46 = vld [vmem:[%s3321_s2 + $0x88] sm:$0xff]  ;;  %v2995_v47 = vld [vmem:[%s3321_s2 + $0x90] sm:$0xff]  ;;  %v3001_v49 = vld [vmem:[%s3321_s2 + $0x98] sm:$0xff] }
 0x23d   :  { %v782_v11 = vmul.f32 %v764_v9, %v2641_v29  ;;  %v769_v12 = vmul.f32 %v1708_v35, %v768_v50  ;;  %v2887_v29 = vld [vmem:[%s3321_s2 + $0x158] sm:$0xff]  ;;  %3526 = vst [vmem:[#allocation5_spill] sm:$0xff] %v2977_v44  ;;  %v3007_v50 = vld [vmem:[%s3321_s2 + $0x60] sm:$0xff]  ;;  %v3013_v54 = vld [vmem:[%s3321_s2 + $0x68] sm:$0xff] }
 0x23e   :  { %3527 = vst [vmem:[#allocation10_spill] sm:$0xff] %v2983_v45  ;;  %v3019_v8 = vld [vmem:[%s3321_s2 + $0x70] sm:$0xff]  ;;  %v3025_v9 = vld [vmem:[%s3321_s2 + $0x78] sm:$0xff] }
 0x23f   :  { %v2858_v13 = vadd.f32 %v783_v10, %v782_v11  ;;  %v770_v14 = vadd.f32 %v1708_v35, %v769_v12  ;;  %3528 = vst [vmem:[#allocation16_spill] sm:$0xff] %v2989_v46  ;;  %v3031_v10 = vld [vmem:[%s3321_s2 + $0x40] sm:$0xff]  ;;  %v3037_v11 = vld [vmem:[%s3321_s2 + $0x48] sm:$0xff]  ;;  %v3043_v12 = vld [vmem:[%s3321_s2 + $0x50] sm:$0xff] }
 0x240   :  { %3529 = vst [vmem:[#allocation8_spill] sm:$0xff] %v2995_v47 }
 0x241   :  { %1711 = vtanh.f32 %v2858_v13  ;;  %v774_v19 = vsel %vm773_vm3, %v1708_v35, %v770_v14  ;;  %v2959_v35 = vld [vmem:[%s3321_s2 + $0xa0] sm:$0xff]  ;;  %3530 = vst [vmem:[#allocation9_spill] sm:$0xff] %v3001_v49  ;;  %v3049_v14 = vld [vmem:[%s3321_s2 + $0x58] sm:$0xff] }
 0x242   :  { %v779_v22 = vsel %vm776_vm4, %v778_v20, %v774_v19  ;;  %3523 = vst [vmem:[#allocation6_spill] sm:$0xff] %v2959_v35  ;;  %v3067_v19 = vld [vmem:[%s3321_s2 + $0x30] sm:$0xff]  ;;  %v3073_v20 = vld [vmem:[%s3321_s2 + $0x38] sm:$0xff] }
 0x243   :  { %3531 = vst [vmem:[#allocation14_spill] sm:$0xff] %v3007_v50 }
 0x244   :  { %3532 = vst [vmem:[#allocation21_spill] sm:$0xff] %v3013_v54 }
 0x245   :  { %3533 = vst [vmem:[#allocation11_spill] sm:$0xff] %v3019_v8 }
 0x246   :  { %3534 = vst [vmem:[#allocation13_spill] sm:$0xff] %v3025_v9 }
 0x247   :  { %v1712_v21 = vpop.eup %1711  ;;  %3535 = vst [vmem:[#allocation18_spill] sm:$0xff] %v3031_v10 }
 0x248   :  { %v786_v23 = vmul.f32 %v1712_v21, %v779_v22  ;;  %3536 = vst [vmem:[#allocation23_spill] sm:$0xff] %v3037_v11  ;;  %v3079_v21 = vld [vmem:[%s3321_s2] sm:$0xff]  ;;  %v3085_v22 = vld [vmem:[%s3321_s2 + $0x8] sm:$0xff] }
 0x249   :  { %3537 = vst [vmem:[#allocation15_spill] sm:$0xff] %v3043_v12 }
 0x24a   :  { %810 = vmatmul.f32.vlgmr.msra.gmra.mxu0 %v786_v23  ;;  %830 = vmatmul.f32.vlgmr.msrb.gmra.mxu1 %v786_v23  ;;  %3538 = vst [vmem:[#allocation17_spill] sm:$0xff] %v3049_v14 }
 0x24b   :  { %850 = vmatmul.f32.vlgmr.msrb.gmra.mxu2 %v786_v23  ;;  %870 = vmatmul.f32.vlgmr.msrb.gmra.mxu3 %v786_v23  ;;  %3541 = vst [vmem:[#allocation19_spill] sm:$0xff] %v3067_v19  ;;  %v3091_v23 = vld [vmem:[%s3321_s2 + $0x10] sm:$0xff] }
 0x24c   :  { %1102 = vmatpush.msra.mxu0 %v2647_v57  ;;  %1122 = vmatpush.msrb.mxu1 %v2653_v42  ;;  %3542 = vst [vmem:[#allocation20_spill] sm:$0xff] %v3073_v20 }
 0x24d   :  { %1142 = vmatpush.msrb.mxu2 %v2659_v36  ;;  %1162 = vmatpush.msrb.mxu3 %v2665_v38  ;;  %3543 = vst [vmem:[#allocation24_spill] sm:$0xff] %v3079_v21 }
 0x24e   :  { %1103 = vmatpush.msra.mxu0 %v2671_v39  ;;  %1123 = vmatpush.msrb.mxu1 %v2677_v48  ;;  %3544 = vst [vmem:[#allocation26_spill] sm:$0xff] %v3085_v22 }
 0x24f   :  { %1143 = vmatpush.msrb.mxu2 %v2683_v51  ;;  %1163 = vmatpush.msrb.mxu3 %v2689_v53  ;;  %3545 = vst [vmem:[#allocation30_spill] sm:$0xff] %v3091_v23 }
 0x250   :  { %1104 = vmatpush.msra.mxu0 %v2695_v55  ;;  %1124 = vmatpush.msrb.mxu1 %v2701_v61 }
 0x251   :  { %1144 = vmatpush.msrb.mxu2 %v2707_v52  ;;  %1164 = vmatpush.msrb.mxu3 %v2713_v1 }
 0x252   :  { %1105 = vmatpush.msra.mxu0 %v2719_v15  ;;  %1125 = vmatpush.msrb.mxu1 %v2725_v4 }
 0x253   :  { %1145 = vmatpush.msrb.mxu2 %v2731_v0  ;;  %1165 = vmatpush.msrb.mxu3 %v2737_v6 }
 0x254   :  { %1106 = vmatpush.msra.mxu0 %v2743_v2  ;;  %1126 = vmatpush.msrb.mxu1 %v2749_v5 }
 0x255   :  { %1146 = vmatpush.msrb.mxu2 %v2755_v7  ;;  %1166 = vmatpush.msrb.mxu3 %v2761_v58 }
 0x256   :  { %1107 = vmatpush.msra.mxu0 %v2767_v62  ;;  %1127 = vmatpush.msrb.mxu1 %v2773_v3 }
 0x257   :  { %1147 = vmatpush.msrb.mxu2 %v2779_v59  ;;  %1167 = vmatpush.msrb.mxu3 %v2887_v29 }
 0x258   :  { %1108 = vmatpush.msra.mxu0 %v2786_v60  ;;  %1128 = vmatpush.msrb.mxu1 %v2792_v56 }
 0x259   :  { %1148 = vmatpush.msrb.mxu2 %v2798_v63  ;;  %1168 = vmatpush.msrb.mxu3 %v2896_v18 }
 0x25a   :  { %1109 = vmatpush.msra.mxu0 %v2805_v37  ;;  %1129 = vmatpush.msrb.mxu1 %v2811_v34 }
 0x25b   :  { %1149 = vmatpush.msrb.mxu2 %v2904_v24  ;;  %1169 = vmatpush.msrb.mxu3 %v2910_v25 }
 0x25c   :  { %1110 = vmatpush.msra.mxu0 %v2916_v26  ;;  %1130 = vmatpush.msrb.mxu1 %v2820_v41 }
 0x25d   :  { %1150 = vmatpush.msrb.mxu2 %v2923_v27  ;;  %1170 = vmatpush.msrb.mxu3 %v2929_v28 }
 0x25e   :  { %1111 = vmatpush.msra.mxu0 %v2935_v30  ;;  %1131 = vmatpush.msrb.mxu1 %v2941_v31 }
 0x25f   :  { %1151 = vmatpush.msrb.mxu2 %v2947_v32  ;;  %1171 = vmatpush.msrb.mxu3 %v2953_v33 }
 0x260   :  { %1112 = vmatpush.msra.mxu0 %v2959_v35  ;;  %1132 = vmatpush.msrb.mxu1 %v2965_v40 }
 0x261   :  { %1152 = vmatpush.msrb.mxu2 %v2971_v43  ;;  %1172 = vmatpush.msrb.mxu3 %v2977_v44 }
 0x262   :  { %1113 = vmatpush.msra.mxu0 %v2983_v45  ;;  %1133 = vmatpush.msrb.mxu1 %v2989_v46 }
 0x263   :  { %1153 = vmatpush.msrb.mxu2 %v2995_v47  ;;  %1173 = vmatpush.msrb.mxu3 %v3001_v49 }
 0x264   :  { %1114 = vmatpush.msra.mxu0 %v3007_v50  ;;  %1134 = vmatpush.msrb.mxu1 %v3013_v54 }
 0x265   :  { %1154 = vmatpush.msrb.mxu2 %v3019_v8  ;;  %1174 = vmatpush.msrb.mxu3 %v3025_v9  ;;  %v3549_v9 = vld [vmem:[#allocation41_spill] sm:$0xff] }
 0x266   :  { %1115 = vmatpush.msra.mxu0 %v3031_v10  ;;  %1135 = vmatpush.msrb.mxu1 %v3037_v11 }
 0x267   :  { %1155 = vmatpush.msrb.mxu2 %v3043_v12  ;;  %1175 = vmatpush.msrb.mxu3 %v3049_v14  ;;  %v3548_v14 = vld [vmem:[#allocation39_spill] sm:$0xff] }
 0x268   :  { %1116 = vmatpush.msra.mxu0 %v3055_v16  ;;  %1136 = vmatpush.msrb.mxu1 %v3061_v17  ;;  %v3547_v17 = vld [vmem:[#allocation36_spill] sm:$0xff] }
 0x269   :  { %1156 = vmatpush.msrb.mxu2 %v3067_v19  ;;  %1176 = vmatpush.msrb.mxu3 %v3073_v20  ;;  %v3097_v20 = vld [vmem:[%s3321_s2 + $0x18] sm:$0xff] }
 0x26a   :  { %1117 = vmatpush.msra.mxu0 %v3079_v21  ;;  %1137 = vmatpush.msrb.mxu1 %v3085_v22  ;;  %3546 = vst [vmem:[#allocation31_spill] sm:$0xff] %v3097_v20 }
 0x26b   :  { %1157 = vmatpush.msrb.mxu2 %v3091_v23  ;;  %1177 = vmatpush.msrb.mxu3 %v3097_v20 }
 0x2c7   :  { %v811_v21 = vpop.f32.mrf.mxu0  ;;  %v831_v19 = vpop.f32.mrf.mxu1 }
 0x2c8   :  { %v874_v16 = vadd.f32 %v811_v21, %v3547_v17  ;;  %v875_v22 = vadd.f32 %v831_v19, %v3548_v14  ;;  %v3550_v14 = vld [vmem:[#allocation42_spill] sm:$0xff] }
 0x2ca   :  { %v1647_v12 = vmul.f32 -1.442695, %v874_v16  ;;  %v1648_v11 = vmul.f32 -1.442695, %v875_v22 }
 0x2cc   :  { %1713 = vpow2.f32 %v1647_v12 }
 0x2cd   :  { %1715 = vpow2.f32 %v1648_v11 }
 0x2ce   :  { %v851_v10 = vpop.f32.mrf.mxu2  ;;  %v871_v20 = vpop.f32.mrf.mxu3 }
 0x2cf   :  { %v876_v23 = vadd.f32 %v851_v10, %v3549_v9  ;;  %v877_v16 = vadd.f32 %v871_v20, %v3550_v14 }
 0x2d1   :  { %v1649_v8 = vmul.f32 -1.442695, %v876_v23 }
 0x2d2   :  { %v1714_v54 = vpop.eup %1713 }
 0x2d3   :  { %v1716_v50 = vpop.eup %1715  ;;  %v887_v49 = vadd.f32 1.0, %v1714_v54  ;;  %1717 = vpow2.f32 %v1649_v8 }
 0x2d4   :  { %v888_v47 = vadd.f32 1.0, %v1716_v50 }
 0x2d5   :  { %1719 = vrcp.f32 %v887_v49  ;;  %v901_v10 = vand.u32 2147483648, %v887_v49  ;;  %v899_v50 = vand.u32 2147483647, %v887_v49  ;;  %vm895_vm7 = vweird.f32 %v887_v49 }
 0x2d6   :  { %1721 = vrcp.f32 %v888_v47  ;;  %v916_v23 = vand.u32 2147483648, %v888_v47  ;;  %v914_v45 = vand.u32 2147483647, %v888_v47  ;;  %vm910_vm8 = vweird.f32 %v888_v47 }
 0x2d7   :  { %v902_v14 = vor.u32 1.1754944e-38, %v901_v10  ;;  %vm900_vm11 = vcmp.eq.f32.partialorder %v899_v50, 8.507059e+37 }
 0x2d8   :  { %vm915_vm12 = vcmp.eq.f32.partialorder %v914_v45, 8.507059e+37 }
 0x2d9   :  { %v1718_v46 = vpop.eup %1717 }
 0x2da   :  { %v889_v17 = vadd.f32 1.0, %v1718_v46 }
 0x2db   :  { %v1720_v21 = vpop.eup %1719 }
 0x2dc   :  { %v1722_v19 = vpop.eup %1721  ;;  %v891_v12 = vmul.f32 %v1720_v21, %v887_v49  ;;  %1723 = vrcp.f32 %v889_v17  ;;  %vm896_vm5 = vweird.f32 %v1720_v21  ;;  %v931_v10 = vand.u32 2147483648, %v889_v17 }
 0x2dd   :  { %v906_v11 = vmul.f32 %v1722_v19, %v888_v47  ;;  %1725 = vtanh.f32 %v877_v16  ;;  %vm911_vm6 = vweird.f32 %v1722_v19  ;;  %vm897_vm9 = vmor %vm895_vm7, %vm896_vm5  ;;  %vm925_vm14 = vweird.f32 %v889_v17 }
 0x2de   :  { %v892_v22 = vsub.f32 1.0, %v891_v12  ;;  %vm912_vm10 = vmor %vm910_vm8, %vm911_vm6  ;;  %v917_v12 = vor.u32 1.1754944e-38, %v916_v23  ;;  %v932_v50 = vor.u32 1.1754944e-38, %v931_v10  ;;  %v3569_v10 = vld [vmem:[#allocation22_spill] sm:$0xff] }
 0x2df   :  { %v907_v9 = vsub.f32 1.0, %v906_v11 }
 0x2e0   :  { %v893_v54 = vmul.f32 %v1720_v21, %v892_v22 }
 0x2e1   :  { %v908_v8 = vmul.f32 %v1722_v19, %v907_v9 }
 0x2e2   :  { %v1724_v44 = vpop.eup %1723  ;;  %v894_v46 = vadd.f32 %v1720_v21, %v893_v54 }
 0x2e3   :  { %v921_v20 = vmul.f32 %v1724_v44, %v889_v17  ;;  %v909_v43 = vadd.f32 %v1722_v19, %v908_v8  ;;  %v1726_v16 = vpop.eup %1725  ;;  %vm926_vm13 = vweird.f32 %v1724_v44  ;;  %v3558_v8 = vld [vmem:[#allocation16_spill] sm:$0xff] }
 0x2e4   :  { %v898_v11 = vsel %vm897_vm9, %v1720_v21, %v894_v46  ;;  %v929_v21 = vand.u32 2147483647, %v889_v17  ;;  %vm927_vm15 = vmor %vm925_vm14, %vm926_vm13  ;;  %v3556_v17 = vld [vmem:[#allocation5_spill] sm:$0xff]  ;;  %v3559_v46 = vld [vmem:[#allocation8_spill] sm:$0xff] }
 0x2e5   :  { %v922_v40 = vsub.f32 1.0, %v921_v20  ;;  %v903_v22 = vsel %vm900_vm11, %v902_v14, %v898_v11  ;;  %v913_v35 = vsel %vm912_vm10, %v1722_v19, %v909_v43  ;;  %v3557_v19 = vld [vmem:[#allocation10_spill] sm:$0xff]  ;;  %v3560_v20 = vld [vmem:[#allocation9_spill] sm:$0xff]  ;;  %v3563_v11 = vld [vmem:[#allocation11_spill] sm:$0xff] }
 0x2e6   :  { %v918_v9 = vsel %vm915_vm12, %v917_v12, %v913_v35  ;;  %v937_v33 = vmul.f32 %v1726_v16, %v903_v22  ;;  %vm930_vm0 = vcmp.eq.f32.partialorder %v929_v21, 8.507059e+37  ;;  %v3561_v14 = vld [vmem:[#allocation14_spill] sm:$0xff]  ;;  %v3562_v12 = vld [vmem:[#allocation21_spill] sm:$0xff] }
 0x2e7   :  { %v936_v32 = vmul.f32 %v918_v9, %v2858_v13  ;;  %v923_v54 = vmul.f32 %v1724_v44, %v922_v40  ;;  %v3551_v13 = vld [vmem:[#allocation4_spill] sm:$0xff]  ;;  %v3564_v16 = vld [vmem:[#allocation13_spill] sm:$0xff]  ;;  %v3565_v22 = vld [vmem:[#allocation18_spill] sm:$0xff] }
 0x2e8   :  { %v3554_v40 = vld [vmem:[#allocation12_spill] sm:$0xff]  ;;  %v3566_v9 = vld [vmem:[#allocation23_spill] sm:$0xff]  ;;  %v3570_v21 = vld [vmem:[#allocation25_spill] sm:$0xff] }
 0x2e9   :  { %v3105_v49 = vadd.f32 %v937_v33, %v936_v32  ;;  %v924_v47 = vadd.f32 %v1724_v44, %v923_v54  ;;  %v3552_v32 = vld [vmem:[#allocation3_spill] sm:$0xff]  ;;  %v3553_v33 = vld [vmem:[#allocation6_spill] sm:$0xff] }
 0x2ea   :  { %v3567_v54 = vld [vmem:[#allocation15_spill] sm:$0xff] }
 0x2eb   :  { %1727 = vtanh.f32 %v3105_v49  ;;  %v928_v23 = vsel %vm927_vm15, %v1724_v44, %v924_v47  ;;  %v3555_v44 = vld [vmem:[#allocation7_spill] sm:$0xff]  ;;  %v3568_v47 = vld [vmem:[#allocation17_spill] sm:$0xff] }
 0x2ec   :  { %v933_v45 = vsel %vm930_vm0, %v932_v50, %v928_v23  ;;  %v3571_v23 = vld [vmem:[#allocation19_spill] sm:$0xff]  ;;  %v3572_v50 = vld [vmem:[#allocation20_spill] sm:$0xff] }
 0x2f1   :  { %v1728_v43 = vpop.eup %1727 }
 0x2f2   :  { %v940_v35 = vmul.f32 %v1728_v43, %v933_v45  ;;  %v3573_v43 = vld [vmem:[#allocation24_spill] sm:$0xff]  ;;  %v3574_v45 = vld [vmem:[#allocation26_spill] sm:$0xff] }
 0x2f4   :  { %964 = vmatmul.f32.vlgmr.msrb.gmra.mxu0 %v940_v35  ;;  %984 = vmatmul.f32.vlgmr.msra.gmra.mxu1 %v940_v35 }
 0x2f5   :  { %1004 = vmatmul.f32.vlgmr.msra.gmra.mxu2 %v940_v35  ;;  %1024 = vmatmul.f32.vlgmr.msra.gmra.mxu3 %v940_v35  ;;  %v3575_v35 = vld [vmem:[#allocation30_spill] sm:$0xff] }
 0x2f6   :  { %1256 = vmatpush.msrb.mxu0 %v2647_v57  ;;  %1276 = vmatpush.msra.mxu1 %v2653_v42 }
 0x2f7   :  { %1296 = vmatpush.msra.mxu2 %v2659_v36  ;;  %1316 = vmatpush.msra.mxu3 %v2665_v38 }
 0x2f8   :  { %1257 = vmatpush.msrb.mxu0 %v2671_v39  ;;  %1277 = vmatpush.msra.mxu1 %v2677_v48 }
 0x2f9   :  { %1297 = vmatpush.msra.mxu2 %v2683_v51  ;;  %1317 = vmatpush.msra.mxu3 %v2689_v53 }
 0x2fa   :  { %1258 = vmatpush.msrb.mxu0 %v2695_v55  ;;  %1278 = vmatpush.msra.mxu1 %v2701_v61 }
 0x2fb   :  { %1298 = vmatpush.msra.mxu2 %v2707_v52  ;;  %1318 = vmatpush.msra.mxu3 %v2713_v1 }
 0x2fc   :  { %1259 = vmatpush.msrb.mxu0 %v2719_v15  ;;  %1279 = vmatpush.msra.mxu1 %v2725_v4 }
 0x2fd   :  { %1299 = vmatpush.msra.mxu2 %v2731_v0  ;;  %1319 = vmatpush.msra.mxu3 %v2737_v6 }
 0x2fe   :  { %1260 = vmatpush.msrb.mxu0 %v2743_v2  ;;  %1280 = vmatpush.msra.mxu1 %v2749_v5 }
 0x2ff   :  { %1300 = vmatpush.msra.mxu2 %v2755_v7  ;;  %1320 = vmatpush.msra.mxu3 %v2761_v58 }
 0x300   :  { %1261 = vmatpush.msrb.mxu0 %v2767_v62  ;;  %1281 = vmatpush.msra.mxu1 %v2773_v3 }
 0x301   :  { %1301 = vmatpush.msra.mxu2 %v2779_v59  ;;  %1321 = vmatpush.msra.mxu3 %v2887_v29 }
 0x302   :  { %1262 = vmatpush.msrb.mxu0 %v2786_v60  ;;  %1282 = vmatpush.msra.mxu1 %v2792_v56 }
 0x303   :  { %1302 = vmatpush.msra.mxu2 %v2798_v63  ;;  %1322 = vmatpush.msra.mxu3 %v2896_v18 }
 0x304   :  { %1263 = vmatpush.msrb.mxu0 %v2805_v37  ;;  %1283 = vmatpush.msra.mxu1 %v2811_v34 }
 0x305   :  { %1303 = vmatpush.msra.mxu2 %v2904_v24  ;;  %1323 = vmatpush.msra.mxu3 %v2910_v25 }
 0x306   :  { %1264 = vmatpush.msrb.mxu0 %v2916_v26  ;;  %1284 = vmatpush.msra.mxu1 %v2820_v41 }
 0x307   :  { %1304 = vmatpush.msra.mxu2 %v2923_v27  ;;  %1324 = vmatpush.msra.mxu3 %v2929_v28 }
 0x308   :  { %1265 = vmatpush.msrb.mxu0 %v2935_v30  ;;  %1285 = vmatpush.msra.mxu1 %v2941_v31 }
 0x309   :  { %1305 = vmatpush.msra.mxu2 %v3551_v13  ;;  %1325 = vmatpush.msra.mxu3 %v3552_v32 }
 0x30a   :  { %1266 = vmatpush.msrb.mxu0 %v3553_v33  ;;  %1286 = vmatpush.msra.mxu1 %v3554_v40 }
 0x30b   :  { %1306 = vmatpush.msra.mxu2 %v3555_v44  ;;  %1326 = vmatpush.msra.mxu3 %v3556_v17 }
 0x30c   :  { %1267 = vmatpush.msrb.mxu0 %v3557_v19  ;;  %1287 = vmatpush.msra.mxu1 %v3558_v8 }
 0x30d   :  { %1307 = vmatpush.msra.mxu2 %v3559_v46  ;;  %1327 = vmatpush.msra.mxu3 %v3560_v20 }
 0x30e   :  { %1268 = vmatpush.msrb.mxu0 %v3561_v14  ;;  %1288 = vmatpush.msra.mxu1 %v3562_v12 }
 0x30f   :  { %1308 = vmatpush.msra.mxu2 %v3563_v11  ;;  %1328 = vmatpush.msra.mxu3 %v3564_v16  ;;  %v3577_v16 = vld [vmem:[#allocation40_spill] sm:$0xff]  ;;  %v3578_v11 = vld [vmem:[#allocation43_spill] sm:$0xff] }
 0x310   :  { %1269 = vmatpush.msrb.mxu0 %v3565_v22  ;;  %1289 = vmatpush.msra.mxu1 %v3566_v9  ;;  %v3576_v22 = vld [vmem:[#allocation31_spill] sm:$0xff] }
 0x311   :  { %1309 = vmatpush.msra.mxu2 %v3567_v54  ;;  %1329 = vmatpush.msra.mxu3 %v3568_v47 }
 0x312   :  { %1270 = vmatpush.msrb.mxu0 %v3569_v10  ;;  %1290 = vmatpush.msra.mxu1 %v3570_v21 }
 0x313   :  { %1310 = vmatpush.msra.mxu2 %v3571_v23  ;;  %1330 = vmatpush.msra.mxu3 %v3572_v50  ;;  %v3579_v50 = vld [vmem:[#allocation44_spill] sm:$0xff] }
 0x314   :  { %1271 = vmatpush.msrb.mxu0 %v3573_v43  ;;  %1291 = vmatpush.msra.mxu1 %v3574_v45 }
 0x315   :  { %1311 = vmatpush.msra.mxu2 %v3575_v35  ;;  %1331 = vmatpush.msra.mxu3 %v3576_v22 }
 0x371   :  { %v965_v9 = vpop.f32.mrf.mxu0  ;;  %v985_v54 = vpop.f32.mrf.mxu1 }
 0x372   :  { %v1028_v47 = vadd.f32 %v965_v9, %v3577_v16  ;;  %v1029_v10 = vadd.f32 %v985_v54, %v3578_v11  ;;  %v3580_v11 = vld [vmem:[#allocation45_spill] sm:$0xff] }
 0x374   :  { %v1650_v12 = vmul.f32 -1.442695, %v1028_v47  ;;  %v1651_v21 = vmul.f32 -1.442695, %v1029_v10 }
 0x376   :  { %1729 = vpow2.f32 %v1650_v12 }
 0x377   :  { %1731 = vpow2.f32 %v1651_v21 }
 0x378   :  { %v1005_v23 = vpop.f32.mrf.mxu2  ;;  %v1025_v22 = vpop.f32.mrf.mxu3 }
 0x379   :  { %v1030_v14 = vadd.f32 %v1005_v23, %v3579_v50  ;;  %v1031_v54 = vadd.f32 %v1025_v22, %v3580_v11 }
 0x37b   :  { %v1652_v43 = vmul.f32 -1.442695, %v1030_v14 }
 0x37c   :  { %v1730_v20 = vpop.eup %1729 }
 0x37d   :  { %v1732_v45 = vpop.eup %1731  ;;  %v1041_v46 = vadd.f32 1.0, %v1730_v20  ;;  %1733 = vpow2.f32 %v1652_v43 }
 0x37e   :  { %v1042_v35 = vadd.f32 1.0, %v1732_v45 }
 0x37f   :  { %1735 = vrcp.f32 %v1041_v46  ;;  %v1055_v14 = vand.u32 2147483648, %v1041_v46  ;;  %v1053_v43 = vand.u32 2147483647, %v1041_v46  ;;  %vm1049_vm3 = vweird.f32 %v1041_v46 }
 0x380   :  { %1737 = vrcp.f32 %v1042_v35  ;;  %v1070_v50 = vand.u32 2147483648, %v1042_v35  ;;  %v1068_v19 = vand.u32 2147483647, %v1042_v35  ;;  %vm1064_vm4 = vweird.f32 %v1042_v35 }
 0x381   :  { %v1056_v11 = vor.u32 1.1754944e-38, %v1055_v14  ;;  %vm1054_vm7 = vcmp.eq.f32.partialorder %v1053_v43, 8.507059e+37 }
 0x382   :  { %vm1069_vm8 = vcmp.eq.f32.partialorder %v1068_v19, 8.507059e+37 }
 0x383   :  { %v1734_v8 = vpop.eup %1733 }
 0x384   :  { %v1043_v16 = vadd.f32 1.0, %v1734_v8 }
 0x385   :  { %v1736_v9 = vpop.eup %1735 }
 0x386   :  { %v1738_v47 = vpop.eup %1737  ;;  %v1045_v12 = vmul.f32 %v1736_v9, %v1041_v46  ;;  %1739 = vrcp.f32 %v1043_v16  ;;  %vm1050_vm1 = vweird.f32 %v1736_v9  ;;  %v1085_v14 = vand.u32 2147483648, %v1043_v16 }
 0x387   :  { %v1060_v10 = vmul.f32 %v1738_v47, %v1042_v35  ;;  %1741 = vtanh.f32 %v1031_v54  ;;  %vm1065_vm2 = vweird.f32 %v1738_v47  ;;  %vm1051_vm5 = vmor %vm1049_vm3, %vm1050_vm1  ;;  %vm1079_vm10 = vweird.f32 %v1043_v16 }
 0x388   :  { %v1046_v21 = vsub.f32 1.0, %v1045_v12  ;;  %vm1066_vm6 = vmor %vm1064_vm4, %vm1065_vm2  ;;  %v1071_v12 = vor.u32 1.1754944e-38, %v1070_v50  ;;  %v1086_v43 = vor.u32 1.1754944e-38, %v1085_v14 }
 0x389   :  { %v1061_v23 = vsub.f32 1.0, %v1060_v10 }
 0x38a   :  { %v1047_v20 = vmul.f32 %v1736_v9, %v1046_v21 }
 0x38b   :  { %v1062_v45 = vmul.f32 %v1738_v47, %v1061_v23 }
 0x38c   :  { %v1740_v17 = vpop.eup %1739  ;;  %v1048_v8 = vadd.f32 %v1736_v9, %v1047_v20 }
 0x38d   :  { %v1075_v22 = vmul.f32 %v1740_v17, %v1043_v16  ;;  %v1063_v44 = vadd.f32 %v1738_v47, %v1062_v45  ;;  %v1742_v54 = vpop.eup %1741  ;;  %vm1080_vm9 = vweird.f32 %v1740_v17 }
 0x38e   :  { %v1052_v10 = vsel %vm1051_vm5, %v1736_v9, %v1048_v8  ;;  %v1083_v9 = vand.u32 2147483647, %v1043_v16  ;;  %vm1081_vm11 = vmor %vm1079_vm10, %vm1080_vm9  ;;  %v3610_v8 = vld [vmem:[#allocation49_spill] sm:$0xff] }
 0x38f   :  { %v1076_v40 = vsub.f32 1.0, %v1075_v22  ;;  %v1057_v21 = vsel %vm1054_vm7, %v1056_v11, %v1052_v10  ;;  %v1067_v33 = vsel %vm1066_vm6, %v1738_v47, %v1063_v44 }
 0x390   :  { %v1072_v23 = vsel %vm1069_vm8, %v1071_v12, %v1067_v33  ;;  %v1091_v32 = vmul.f32 %v1742_v54, %v1057_v21  ;;  %vm1084_vm12 = vcmp.eq.f32.partialorder %v1083_v9, 8.507059e+37 }
 0x391   :  { %v1090_v13 = vmul.f32 %v1072_v23, %v3105_v49  ;;  %v1077_v20 = vmul.f32 %v1740_v17, %v1076_v40 }
 0x393   :  { %v3177_v46 = vadd.f32 %v1091_v32, %v1090_v13  ;;  %v1078_v35 = vadd.f32 %v1740_v17, %v1077_v20 }
 0x395   :  { %1743 = vtanh.f32 %v3177_v46  ;;  %v1082_v50 = vsel %vm1081_vm11, %v1740_v17, %v1078_v35 }
 0x396   :  { %v1087_v19 = vsel %vm1084_vm12, %v1086_v43, %v1082_v50 }
 0x39b   :  { %v1744_v44 = vpop.eup %1743 }
 0x39c   :  { %v1094_v33 = vmul.f32 %v1744_v44, %v1087_v19 }
 0x39e   :  { %1118 = vmatmul.f32.vlgmr.msra.gmra.mxu0 %v1094_v33  ;;  %1138 = vmatmul.f32.vlgmr.msrb.gmra.mxu1 %v1094_v33 }
 0x39f   :  { %1158 = vmatmul.f32.vlgmr.msrb.gmra.mxu2 %v1094_v33  ;;  %1178 = vmatmul.f32.vlgmr.msrb.gmra.mxu3 %v1094_v33 }
 0x3a0   :  { %1410 = vmatpush.msra.mxu0 %v2647_v57  ;;  %1430 = vmatpush.msrb.mxu1 %v2653_v42  ;;  %v3581_v57 = vld [vmem:[#allocation4_spill] sm:$0xff]  ;;  %v3582_v42 = vld [vmem:[#allocation3_spill] sm:$0xff] }
 0x3a1   :  { %1450 = vmatpush.msrb.mxu2 %v2659_v36  ;;  %1470 = vmatpush.msrb.mxu3 %v2665_v38  ;;  %v3583_v36 = vld [vmem:[#allocation6_spill] sm:$0xff]  ;;  %v3584_v38 = vld [vmem:[#allocation12_spill] sm:$0xff] }
 0x3a2   :  { %1411 = vmatpush.msra.mxu0 %v2671_v39  ;;  %1431 = vmatpush.msrb.mxu1 %v2677_v48  ;;  %v3585_v39 = vld [vmem:[#allocation7_spill] sm:$0xff]  ;;  %v3586_v48 = vld [vmem:[#allocation5_spill] sm:$0xff] }
 0x3a3   :  { %1451 = vmatpush.msrb.mxu2 %v2683_v51  ;;  %1471 = vmatpush.msrb.mxu3 %v2689_v53  ;;  %v3587_v51 = vld [vmem:[#allocation10_spill] sm:$0xff]  ;;  %v3588_v53 = vld [vmem:[#allocation16_spill] sm:$0xff] }
 0x3a4   :  { %1412 = vmatpush.msra.mxu0 %v2695_v55  ;;  %1432 = vmatpush.msrb.mxu1 %v2701_v61  ;;  %v3589_v55 = vld [vmem:[#allocation8_spill] sm:$0xff]  ;;  %v3590_v61 = vld [vmem:[#allocation9_spill] sm:$0xff] }
 0x3a5   :  { %1452 = vmatpush.msrb.mxu2 %v2707_v52  ;;  %1472 = vmatpush.msrb.mxu3 %v2713_v1  ;;  %v3591_v52 = vld [vmem:[#allocation14_spill] sm:$0xff]  ;;  %v3592_v1 = vld [vmem:[#allocation21_spill] sm:$0xff] }
 0x3a6   :  { %1413 = vmatpush.msra.mxu0 %v2719_v15  ;;  %1433 = vmatpush.msrb.mxu1 %v2725_v4  ;;  %v3593_v15 = vld [vmem:[#allocation11_spill] sm:$0xff]  ;;  %v3594_v4 = vld [vmem:[#allocation13_spill] sm:$0xff] }
 0x3a7   :  { %1453 = vmatpush.msrb.mxu2 %v2731_v0  ;;  %1473 = vmatpush.msrb.mxu3 %v2737_v6  ;;  %v3595_v0 = vld [vmem:[#allocation18_spill] sm:$0xff]  ;;  %v3596_v6 = vld [vmem:[#allocation23_spill] sm:$0xff] }
 0x3a8   :  { %1414 = vmatpush.msra.mxu0 %v2743_v2  ;;  %1434 = vmatpush.msrb.mxu1 %v2749_v5  ;;  %v3597_v2 = vld [vmem:[#allocation15_spill] sm:$0xff]  ;;  %v3598_v5 = vld [vmem:[#allocation17_spill] sm:$0xff] }
 0x3a9   :  { %1454 = vmatpush.msrb.mxu2 %v2755_v7  ;;  %1474 = vmatpush.msrb.mxu3 %v2761_v58  ;;  %v3599_v7 = vld [vmem:[#allocation22_spill] sm:$0xff]  ;;  %v3600_v58 = vld [vmem:[#allocation25_spill] sm:$0xff] }
 0x3aa   :  { %1415 = vmatpush.msra.mxu0 %v2767_v62  ;;  %1435 = vmatpush.msrb.mxu1 %v2773_v3  ;;  %v3601_v62 = vld [vmem:[#allocation19_spill] sm:$0xff]  ;;  %v3602_v3 = vld [vmem:[#allocation20_spill] sm:$0xff] }
 0x3ab   :  { %1455 = vmatpush.msrb.mxu2 %v2779_v59  ;;  %1475 = vmatpush.msrb.mxu3 %v2887_v29  ;;  %v3603_v59 = vld [vmem:[#allocation24_spill] sm:$0xff] }
 0x3ac   :  { %1416 = vmatpush.msra.mxu0 %v2786_v60  ;;  %1436 = vmatpush.msrb.mxu1 %v2792_v56  ;;  %v3604_v60 = vld [vmem:[#allocation26_spill] sm:$0xff] }
 0x3ad   :  { %1456 = vmatpush.msrb.mxu2 %v2798_v63  ;;  %1476 = vmatpush.msrb.mxu3 %v2896_v18  ;;  %v3605_v56 = vld [vmem:[#allocation30_spill] sm:$0xff]  ;;  %v3606_v63 = vld [vmem:[#allocation31_spill] sm:$0xff] }
 0x3ae   :  { %1417 = vmatpush.msra.mxu0 %v2805_v37  ;;  %1437 = vmatpush.msrb.mxu1 %v2811_v34  ;;  %v3608_v18 = vld [vmem:[#allocation46_spill] sm:$0xff] }
 0x3af   :  { %1457 = vmatpush.msrb.mxu2 %v2904_v24  ;;  %1477 = vmatpush.msrb.mxu3 %v2910_v25 }
 0x3b0   :  { %1418 = vmatpush.msra.mxu0 %v2916_v26  ;;  %1438 = vmatpush.msrb.mxu1 %v2820_v41  ;;  %v3607_v41 = vld [vmem:[#allocation27_spill] sm:$0xff] }
 0x3b1   :  { %1458 = vmatpush.msrb.mxu2 %v2923_v27  ;;  %1478 = vmatpush.msrb.mxu3 %v2929_v28  ;;  %v3609_v28 = vld [vmem:[#allocation47_spill] sm:$0xff] }
 0x3b2   :  { %1419 = vmatpush.msra.mxu0 %v2935_v30  ;;  %1439 = vmatpush.msrb.mxu1 %v2941_v31 }
 0x3b3   :  { %1459 = vmatpush.msrb.mxu2 %v3581_v57  ;;  %1479 = vmatpush.msrb.mxu3 %v3582_v42 }
 0x3b4   :  { %1420 = vmatpush.msra.mxu0 %v3583_v36  ;;  %1440 = vmatpush.msrb.mxu1 %v3584_v38 }
 0x3b5   :  { %1460 = vmatpush.msrb.mxu2 %v3585_v39  ;;  %1480 = vmatpush.msrb.mxu3 %v3586_v48 }
 0x3b6   :  { %1421 = vmatpush.msra.mxu0 %v3587_v51  ;;  %1441 = vmatpush.msrb.mxu1 %v3588_v53 }
 0x3b7   :  { %1461 = vmatpush.msrb.mxu2 %v3589_v55  ;;  %1481 = vmatpush.msrb.mxu3 %v3590_v61 }
 0x3b8   :  { %1422 = vmatpush.msra.mxu0 %v3591_v52  ;;  %1442 = vmatpush.msrb.mxu1 %v3592_v1 }
 0x3b9   :  { %1462 = vmatpush.msrb.mxu2 %v3593_v15  ;;  %1482 = vmatpush.msrb.mxu3 %v3594_v4 }
 0x3ba   :  { %1423 = vmatpush.msra.mxu0 %v3595_v0  ;;  %1443 = vmatpush.msrb.mxu1 %v3596_v6 }
 0x3bb   :  { %1463 = vmatpush.msrb.mxu2 %v3597_v2  ;;  %1483 = vmatpush.msrb.mxu3 %v3598_v5 }
 0x3bc   :  { %1424 = vmatpush.msra.mxu0 %v3599_v7  ;;  %1444 = vmatpush.msrb.mxu1 %v3600_v58 }
 0x3bd   :  { %1464 = vmatpush.msrb.mxu2 %v3601_v62  ;;  %1484 = vmatpush.msrb.mxu3 %v3602_v3  ;;  %v3611_v3 = vld [vmem:[#allocation28_spill] sm:$0xff] }
 0x3be   :  { %1425 = vmatpush.msra.mxu0 %v3603_v59  ;;  %1445 = vmatpush.msrb.mxu1 %v3604_v60  ;;  %v3612_v60 = vld [vmem:[#allocation48_spill] sm:$0xff] }
 0x3bf   :  { %1465 = vmatpush.msrb.mxu2 %v3605_v56  ;;  %1485 = vmatpush.msrb.mxu3 %v3606_v63 }
 0x41b   :  { %v1119_v37 = vpop.f32.mrf.mxu0  ;;  %v1139_v34 = vpop.f32.mrf.mxu1 }
 0x41c   :  { %v1182_v29 = vadd.f32 %v1119_v37, %v3607_v41  ;;  %v1183_v24 = vadd.f32 %v1139_v34, %v3608_v18  ;;  %v3613_v41 = vld [vmem:[#allocation50_spill] sm:$0xff] }
 0x41e   :  { %v1653_v25 = vmul.f32 -1.442695, %v1182_v29  ;;  %v1654_v26 = vmul.f32 -1.442695, %v1183_v24 }
 0x420   :  { %1745 = vpow2.f32 %v1653_v25 }
 0x421   :  { %1747 = vpow2.f32 %v1654_v26 }
 0x422   :  { %v1159_v27 = vpop.f32.mrf.mxu2  ;;  %v1179_v17 = vpop.f32.mrf.mxu3 }
 0x423   :  { %v1184_v30 = vadd.f32 %v1159_v27, %v3609_v28  ;;  %v1185_v22 = vadd.f32 %v1179_v17, %v3610_v8 }
 0x425   :  { %v1655_v31 = vmul.f32 -1.442695, %v1184_v30 }
 0x426   :  { %v1746_v49 = vpop.eup %1745 }
 0x427   :  { %v1748_v13 = vpop.eup %1747  ;;  %v1195_v32 = vadd.f32 1.0, %v1746_v49  ;;  %1749 = vpow2.f32 %v1655_v31 }
 0x428   :  { %v1196_v40 = vadd.f32 1.0, %v1748_v13  ;;  %v3614_v13 = vld [vmem:[#allocation52_spill] sm:$0xff] }
 0x429   :  { %1751 = vrcp.f32 %v1195_v32  ;;  %v1209_v23 = vand.u32 2147483648, %v1195_v32  ;;  %v1207_v14 = vand.u32 2147483647, %v1195_v32  ;;  %vm1203_vm15 = vweird.f32 %v1195_v32 }
 0x42a   :  { %1753 = vrcp.f32 %v1196_v40  ;;  %v1224_v20 = vand.u32 2147483648, %v1196_v40  ;;  %v1222_v50 = vand.u32 2147483647, %v1196_v40  ;;  %vm1218_vm0 = vweird.f32 %v1196_v40 }
 0x42b   :  { %v1210_v33 = vor.u32 1.1754944e-38, %v1209_v23  ;;  %vm1208_vm3 = vcmp.eq.f32.partialorder %v1207_v14, 8.507059e+37 }
 0x42c   :  { %v1225_v42 = vor.u32 1.1754944e-38, %v1224_v20  ;;  %vm1223_vm4 = vcmp.eq.f32.partialorder %v1222_v50, 8.507059e+37 }
 0x42d   :  { %v1750_v16 = vpop.eup %1749 }
 0x42e   :  { %v1197_v47 = vadd.f32 1.0, %v1750_v16 }
 0x42f   :  { %v1752_v45 = vpop.eup %1751 }
 0x430   :  { %v1754_v11 = vpop.eup %1753  ;;  %v1199_v12 = vmul.f32 %v1752_v45, %v1195_v32  ;;  %1755 = vrcp.f32 %v1197_v47  ;;  %vm1204_vm13 = vweird.f32 %v1752_v45  ;;  %v1239_v4 = vand.u32 2147483648, %v1197_v47 }
 0x431   :  { %v1214_v10 = vmul.f32 %v1754_v11, %v1196_v40  ;;  %1757 = vtanh.f32 %v1185_v22  ;;  %vm1219_vm14 = vweird.f32 %v1754_v11  ;;  %vm1205_vm1 = vmor %vm1203_vm15, %vm1204_vm13  ;;  %vm1233_vm6 = vweird.f32 %v1197_v47 }
 0x432   :  { %v1200_v54 = vsub.f32 1.0, %v1199_v12  ;;  %vm1220_vm2 = vmor %vm1218_vm0, %vm1219_vm14  ;;  %v1237_v0 = vand.u32 2147483647, %v1197_v47  ;;  %v1240_v2 = vor.u32 1.1754944e-38, %v1239_v4 }
 0x433   :  { %v1215_v21 = vsub.f32 1.0, %v1214_v10 }
 0x434   :  { %v1201_v35 = vmul.f32 %v1752_v45, %v1200_v54  ;;  %vm1238_vm8 = vcmp.eq.f32.partialorder %v1237_v0, 8.507059e+37  ;;  %v1571_v0 = vld [vmem:[%s3324_s5 + $0x70] sm:$0xff] }
 0x435   :  { %v1216_v9 = vmul.f32 %v1754_v11, %v1215_v21 }
 0x436   :  { %v1756_v43 = vpop.eup %1755  ;;  %v1202_v44 = vadd.f32 %v1752_v45, %v1201_v35 }
 0x437   :  { %v1229_v19 = vmul.f32 %v1756_v43, %v1197_v47  ;;  %v1217_v57 = vadd.f32 %v1754_v11, %v1216_v9  ;;  %v1758_v38 = vpop.eup %1757  ;;  %vm1234_vm5 = vweird.f32 %v1756_v43 }
 0x438   :  { %v1206_v36 = vsel %vm1205_vm1, %v1752_v45, %v1202_v44  ;;  %vm1235_vm7 = vmor %vm1233_vm6, %vm1234_vm5 }
 0x439   :  { %v1230_v39 = vsub.f32 1.0, %v1229_v19  ;;  %v1211_v48 = vsel %vm1208_vm3, %v1210_v33, %v1206_v36  ;;  %v1221_v51 = vsel %vm1220_vm2, %v1754_v11, %v1217_v57 }
 0x43a   :  { %v1226_v53 = vsel %vm1223_vm4, %v1225_v42, %v1221_v51  ;;  %v1245_v55 = vmul.f32 %v1758_v38, %v1211_v48 }
 0x43b   :  { %v1244_v61 = vmul.f32 %v1226_v53, %v3177_v46  ;;  %v1231_v52 = vmul.f32 %v1756_v43, %v1230_v39 }
 0x43d   :  { %v3249_v1 = vadd.f32 %v1245_v55, %v1244_v61  ;;  %v1232_v15 = vadd.f32 %v1756_v43, %v1231_v52 }
 0x43f   :  { %1759 = vtanh.f32 %v3249_v1  ;;  %v1236_v6 = vsel %vm1235_vm7, %v1756_v43, %v1232_v15 }
 0x440   :  { %v1241_v7 = vsel %vm1238_vm8, %v1240_v2, %v1236_v6  ;;  %v1570_v6 = vld [vmem:[%s3324_s5 + $0x68] sm:$0xff]  ;;  %v1569_v2 = vld [vmem:[%s3324_s5 + $0x60] sm:$0xff] }
 0x445   :  { %v1760_v5 = vpop.eup %1759 }
 0x446   :  { %v1248_v58 = vmul.f32 %v1760_v5, %v1241_v7  ;;  %v1568_v5 = vld [vmem:[%s3324_s5 + $0x58] sm:$0xff]  ;;  %v1567_v7 = vld [vmem:[%s3324_s5 + $0x50] sm:$0xff] }
 0x448   :  { %1272 = vmatmul.f32.vlgmr.msrb.gmra.mxu0 %v1248_v58  ;;  %1292 = vmatmul.f32.vlgmr.msra.gmra.mxu1 %v1248_v58 }
 0x449   :  { %1312 = vmatmul.f32.vlgmr.msra.gmra.mxu2 %v1248_v58  ;;  %1332 = vmatmul.f32.vlgmr.msra.gmra.mxu3 %v1248_v58  ;;  %v1566_v58 = vld [vmem:[%s3324_s5 + $0x48] sm:$0xff] }
 0x4c5   :  { %v1273_v46 = vpop.f32.mrf.mxu0  ;;  %v1293_v62 = vpop.f32.mrf.mxu1 }
 0x4c6   :  { %v1336_v59 = vadd.f32 %v1273_v46, %v3611_v3  ;;  %v1337_v56 = vadd.f32 %v1293_v62, %v3612_v60  ;;  %v1565_v46 = vld [vmem:[%s3324_s5 + $0x40] sm:$0xff]  ;;  %v1564_v62 = vld [vmem:[%s3324_s5 + $0x38] sm:$0xff]  ;;  %v1563_v3 = vld [vmem:[%s3324_s5 + $0x30] sm:$0xff] }
 0x4c8   :  { %v1656_v63 = vmul.f32 -1.442695, %v1336_v59  ;;  %v1657_v37 = vmul.f32 -1.442695, %v1337_v56  ;;  %v3615_v56 = vld [vmem:[#allocation29_spill] sm:$0xff] }
 0x4ca   :  { %1761 = vpow2.f32 %v1656_v63 }
 0x4cb   :  { %1763 = vpow2.f32 %v1657_v37  ;;  %v3616_v37 = vld [vmem:[#allocation51_spill] sm:$0xff] }
 0x4cc   :  { %v1313_v34 = vpop.f32.mrf.mxu2  ;;  %v1333_v28 = vpop.f32.mrf.mxu3 }
 0x4cd   :  { %v1338_v29 = vadd.f32 %v1313_v34, %v3613_v41  ;;  %v1339_v32 = vadd.f32 %v1333_v28, %v3614_v13  ;;  %v1562_v41 = vld [vmem:[%s3324_s5 + $0x28] sm:$0xff] }
 0x4ce   :  { %v1558_v28 = vld [vmem:[%s3324_s5 + $0x8] sm:$0xff] }
 0x4cf   :  { %v1658_v18 = vmul.f32 -1.442695, %v1338_v29 }
 0x4d0   :  { %v1762_v24 = vpop.eup %1761 }
 0x4d1   :  { %v1764_v25 = vpop.eup %1763  ;;  %v1349_v26 = vadd.f32 1.0, %v1762_v24  ;;  %1765 = vpow2.f32 %v1658_v18  ;;  %v1561_v24 = vld [vmem:[%s3324_s5 + $0x20] sm:$0xff] }
 0x4d2   :  { %v1350_v27 = vadd.f32 1.0, %v1764_v25  ;;  %v1560_v25 = vld [vmem:[%s3324_s5 + $0x18] sm:$0xff] }
 0x4d3   :  { %1767 = vrcp.f32 %v1349_v26  ;;  %v1363_v8 = vand.u32 2147483648, %v1349_v26  ;;  %v1361_v12 = vand.u32 2147483647, %v1349_v26  ;;  %vm1357_vm11 = vweird.f32 %v1349_v26 }
 0x4d4   :  { %1769 = vrcp.f32 %v1350_v27  ;;  %v1378_v22 = vand.u32 2147483648, %v1350_v27  ;;  %v1376_v54 = vand.u32 2147483647, %v1350_v27  ;;  %vm1372_vm12 = vweird.f32 %v1350_v27 }
 0x4d5   :  { %v1364_v35 = vor.u32 1.1754944e-38, %v1363_v8  ;;  %vm1362_vm15 = vcmp.eq.f32.partialorder %v1361_v12, 8.507059e+37 }
 0x4d6   :  { %v1379_v9 = vor.u32 1.1754944e-38, %v1378_v22  ;;  %vm1377_vm0 = vcmp.eq.f32.partialorder %v1376_v54, 8.507059e+37 }
 0x4d7   :  { %v1766_v30 = vpop.eup %1765 }
 0x4d8   :  { %v1351_v31 = vadd.f32 1.0, %v1766_v30  ;;  %v3617_v30 = vld [vmem:[#allocation53_spill] sm:$0xff] }
 0x4d9   :  { %v1768_v49 = vpop.eup %1767 }
 0x4da   :  { %v1770_v40 = vpop.eup %1769  ;;  %v1353_v17 = vmul.f32 %v1768_v49, %v1349_v26  ;;  %1771 = vrcp.f32 %v1351_v31  ;;  %vm1358_vm9 = vweird.f32 %v1768_v49  ;;  %v1393_v51 = vand.u32 2147483648, %v1351_v31  ;;  %v1559_v26 = vld [vmem:[%s3324_s5 + $0x10] sm:$0xff] }
 0x4db   :  { %v1368_v16 = vmul.f32 %v1770_v40, %v1350_v27  ;;  %1773 = vtanh.f32 %v1339_v32  ;;  %vm1373_vm10 = vweird.f32 %v1770_v40  ;;  %vm1359_vm13 = vmor %vm1357_vm11, %vm1358_vm9  ;;  %vm1387_vm2 = vweird.f32 %v1351_v31 }
 0x4dc   :  { %v1354_v47 = vsub.f32 1.0, %v1353_v17  ;;  %vm1374_vm14 = vmor %vm1372_vm12, %vm1373_vm10  ;;  %v1391_v53 = vand.u32 2147483647, %v1351_v31  ;;  %v1394_v61 = vor.u32 1.1754944e-38, %v1393_v51 }
 0x4dd   :  { %v1369_v45 = vsub.f32 1.0, %v1368_v16 }
 0x4de   :  { %v1355_v11 = vmul.f32 %v1768_v49, %v1354_v47  ;;  %vm1392_vm4 = vcmp.eq.f32.partialorder %v1391_v53, 8.507059e+37 }
 0x4df   :  { %v1370_v10 = vmul.f32 %v1770_v40, %v1369_v45 }
 0x4e0   :  { %v1772_v21 = vpop.eup %1771  ;;  %v1356_v23 = vadd.f32 %v1768_v49, %v1355_v11  ;;  %v3618_v11 = vld [vmem:[#allocation54_spill] sm:$0xff] }
 0x4e1   :  { %v1383_v20 = vmul.f32 %v1772_v21, %v1351_v31  ;;  %v1371_v14 = vadd.f32 %v1770_v40, %v1370_v10  ;;  %v1774_v43 = vpop.eup %1773  ;;  %vm1388_vm1 = vweird.f32 %v1772_v21 }
 0x4e2   :  { %v1360_v50 = vsel %vm1359_vm13, %v1768_v49, %v1356_v23  ;;  %vm1389_vm3 = vmor %vm1387_vm2, %vm1388_vm1  ;;  %v1557_v49 = vld [vmem:[%s3324_s5] sm:$0xff] }
 0x4e3   :  { %v1384_v44 = vsub.f32 1.0, %v1383_v20  ;;  %v1365_v19 = vsel %vm1362_vm15, %v1364_v35, %v1360_v50  ;;  %v1375_v33 = vsel %vm1374_vm14, %v1770_v40, %v1371_v14 }
 0x4e4   :  { %v1380_v57 = vsel %vm1377_vm0, %v1379_v9, %v1375_v33  ;;  %v1399_v42 = vmul.f32 %v1774_v43, %v1365_v19 }
 0x4e5   :  { %v1398_v36 = vmul.f32 %v1380_v57, %v3249_v1  ;;  %v1385_v38 = vmul.f32 %v1772_v21, %v1384_v44  ;;  %v1572_v1 = vld [vmem:[%s3324_s5 + $0x78] sm:$0xff] }
 0x4e6   :  { %1574 = vmatpush.msrb.mxu0 %v1572_v1 }
 0x4e7   :  { %v3257_v39 = vadd.f32 %v1399_v42, %v1398_v36  ;;  %v1386_v48 = vadd.f32 %v1772_v21, %v1385_v38 }
 0x4e8   :  { %1575 = vmatpush.msrb.mxu0 %v1571_v0 }
 0x4e9   :  { %1775 = vtanh.f32 %v3257_v39  ;;  %v1390_v55 = vsel %vm1389_vm3, %v1772_v21, %v1386_v48 }
 0x4ea   :  { %v1395_v15 = vsel %vm1392_vm4, %v1394_v61, %v1390_v55  ;;  %1576 = vmatpush.msrb.mxu0 %v1570_v6 }
 0x4ec   :  { %1577 = vmatpush.msrb.mxu0 %v1569_v2 }
 0x4ee   :  { %1578 = vmatpush.msrb.mxu0 %v1568_v5 }
 0x4ef   :  { %v1776_v52 = vpop.eup %1775 }
 0x4f0   :  { %v1402_v4 = vmul.f32 %v1776_v52, %v1395_v15  ;;  %1579 = vmatpush.msrb.mxu0 %v1567_v7 }
 0x4f2   :  { %1426 = vmatmul.f32.vlgmr.msra.gmra.mxu0 %v1402_v4  ;;  %1446 = vmatmul.f32.vlgmr.msrb.gmra.mxu1 %v1402_v4 }
 0x4f3   :  { %1466 = vmatmul.f32.vlgmr.msrb.gmra.mxu2 %v1402_v4  ;;  %1486 = vmatmul.f32.vlgmr.msrb.gmra.mxu3 %v1402_v4 }
 0x4f4   :  { %1580 = vmatpush.msrb.mxu0 %v1566_v58 }
 0x4f6   :  { %1581 = vmatpush.msrb.mxu0 %v1565_v46 }
 0x4f8   :  { %1582 = vmatpush.msrb.mxu0 %v1564_v62 }
 0x4fa   :  { %1583 = vmatpush.msrb.mxu0 %v1563_v3 }
 0x4fc   :  { %1584 = vmatpush.msrb.mxu0 %v1562_v41 }
 0x4fe   :  { %1585 = vmatpush.msrb.mxu0 %v1561_v24 }
 0x500   :  { %1586 = vmatpush.msrb.mxu0 %v1560_v25 }
 0x502   :  { %1587 = vmatpush.msrb.mxu0 %v1559_v26 }
 0x504   :  { %1588 = vmatpush.msrb.mxu0 %v1558_v28 }
 0x506   :  { %1589 = vmatpush.msrb.mxu0 %v1557_v49 }
 0x56f   :  { %v1427_v59 = vpop.f32.mrf.mxu0  ;;  %v1447_v60 = vpop.f32.mrf.mxu1 }
 0x570   :  { %v1490_v63 = vadd.f32 %v1427_v59, %v3615_v56  ;;  %v1491_v34 = vadd.f32 %v1447_v60, %v3616_v37 }
 0x572   :  { %v1659_v29 = vmul.f32 -1.442695, %v1490_v63  ;;  %v1660_v18 = vmul.f32 -1.442695, %v1491_v34 }
 0x574   :  { %1777 = vpow2.f32 %v1659_v29 }
 0x575   :  { %1779 = vpow2.f32 %v1660_v18 }
 0x576   :  { %v1467_v27 = vpop.f32.mrf.mxu2  ;;  %v1487_v47 = vpop.f32.mrf.mxu3 }
 0x577   :  { %v1492_v31 = vadd.f32 %v1467_v27, %v3617_v30  ;;  %v1493_v12 = vadd.f32 %v1487_v47, %v3618_v11 }
 0x579   :  { %v1661_v13 = vmul.f32 -1.442695, %v1492_v31 }
 0x57a   :  { %v1778_v32 = vpop.eup %1777 }
 0x57b   :  { %v1780_v40 = vpop.eup %1779  ;;  %v1503_v17 = vadd.f32 1.0, %v1778_v32  ;;  %1781 = vpow2.f32 %v1661_v13 }
 0x57c   :  { %v1504_v16 = vadd.f32 1.0, %v1780_v40 }
 0x57d   :  { %1783 = vrcp.f32 %v1503_v17  ;;  %v1517_v35 = vand.u32 2147483648, %v1503_v17  ;;  %v1515_v50 = vand.u32 2147483647, %v1503_v17  ;;  %vm1511_vm7 = vweird.f32 %v1503_v17 }
 0x57e   :  { %1785 = vrcp.f32 %v1504_v16  ;;  %v1532_v14 = vand.u32 2147483648, %v1504_v16  ;;  %v1530_v44 = vand.u32 2147483647, %v1504_v16  ;;  %vm1526_vm8 = vweird.f32 %v1504_v16 }
 0x57f   :  { %v1518_v42 = vor.u32 1.1754944e-38, %v1517_v35  ;;  %vm1516_vm11 = vcmp.eq.f32.partialorder %v1515_v50, 8.507059e+37 }
 0x580   :  { %v1533_v38 = vor.u32 1.1754944e-38, %v1532_v14  ;;  %vm1531_vm12 = vcmp.eq.f32.partialorder %v1530_v44, 8.507059e+37 }
 0x581   :  { %v1782_v45 = vpop.eup %1781 }
 0x582   :  { %v1505_v8 = vadd.f32 1.0, %v1782_v45 }
 0x583   :  { %v1784_v22 = vpop.eup %1783 }
 0x584   :  { %v1786_v10 = vpop.eup %1785  ;;  %v1507_v54 = vmul.f32 %v1784_v22, %v1503_v17  ;;  %1787 = vrcp.f32 %v1505_v8  ;;  %vm1512_vm5 = vweird.f32 %v1784_v22  ;;  %v1547_v2 = vand.u32 2147483648, %v1505_v8 }
 0x585   :  { %v1522_v21 = vmul.f32 %v1786_v10, %v1504_v16  ;;  %1789 = vtanh.f32 %v1493_v12  ;;  %vm1527_vm6 = vweird.f32 %v1786_v10  ;;  %vm1513_vm9 = vmor %vm1511_vm7, %vm1512_vm5  ;;  %vm1541_vm14 = vweird.f32 %v1505_v8 }
 0x586   :  { %v1508_v23 = vsub.f32 1.0, %v1507_v54  ;;  %vm1528_vm10 = vmor %vm1526_vm8, %vm1527_vm6  ;;  %v1545_v5 = vand.u32 2147483647, %v1505_v8  ;;  %v1548_v58 = vor.u32 1.1754944e-38, %v1547_v2 }
 0x587   :  { %v1523_v20 = vsub.f32 1.0, %v1522_v21 }
 0x588   :  { %v1509_v9 = vmul.f32 %v1784_v22, %v1508_v23  ;;  %vm1546_vm0 = vcmp.eq.f32.partialorder %v1545_v5, 8.507059e+37 }
 0x589   :  { %v1524_v43 = vmul.f32 %v1786_v10, %v1523_v20 }
 0x58a   :  { %v1788_v19 = vpop.eup %1787  ;;  %v1510_v33 = vadd.f32 %v1784_v22, %v1509_v9 }
 0x58b   :  { %v1537_v57 = vmul.f32 %v1788_v19, %v1505_v8  ;;  %v1525_v36 = vadd.f32 %v1786_v10, %v1524_v43  ;;  %v1790_v51 = vpop.eup %1789  ;;  %vm1542_vm13 = vweird.f32 %v1788_v19 }
 0x58c   :  { %v1514_v48 = vsel %vm1513_vm9, %v1784_v22, %v1510_v33  ;;  %vm1543_vm15 = vmor %vm1541_vm14, %vm1542_vm13 }
 0x58d   :  { %v1538_v53 = vsub.f32 1.0, %v1537_v57  ;;  %v1519_v55 = vsel %vm1516_vm11, %v1518_v42, %v1514_v48  ;;  %v1529_v61 = vsel %vm1528_vm10, %v1786_v10, %v1525_v36 }
 0x58e   :  { %v1534_v52 = vsel %vm1531_vm12, %v1533_v38, %v1529_v61  ;;  %v1553_v15 = vmul.f32 %v1790_v51, %v1519_v55 }
 0x58f   :  { %v1552_v4 = vmul.f32 %v1534_v52, %v3257_v39  ;;  %v1539_v1 = vmul.f32 %v1788_v19, %v1538_v53  ;;  %v1573_v39 = vld [vmem:[%s3325_s6] sm:$0xff] }
 0x591   :  { %v1554_v0 = vadd.f32 %v1553_v15, %v1552_v4  ;;  %v1540_v6 = vadd.f32 %v1788_v19, %v1539_v1 }
 0x593   :  { %1791 = vtanh.f32 %v1554_v0  ;;  %v1544_v7 = vsel %vm1543_vm15, %v1788_v19, %v1540_v6 }
 0x594   :  { %v1549_v62 = vsel %vm1546_vm0, %v1548_v58, %v1544_v7 }
 0x599   :  { %v1792_v46 = vpop.eup %1791 }
 0x59a   :  { %v1556_v3 = vmul.f32 %v1792_v46, %v1549_v62 }
 0x59c   :  { %1590 = vmatmul.f32.vlgmr.msrb.gmra.mxu0 %v1556_v3 }
 0x619   :  { %v1591_v59 = vpop.f32.mrf.mxu0 }
 0x61a   :  { %v1592_v60 = vadd.f32 %v1591_v59, %v1573_v39 }
 0x61c   :  { %1594 = vst [vmem:[%s3326_s7] sm:$0xff] %v1592_v60 }

</bundles_post_ra>
